<compile_context>
chip_gen: v7x
topology: tpu7x:2x2x1
jax: 0.10.0
libtpu: 0.0.40
codegen_flags: <defaults>
</compile_context>

<pallas_src>
import math
import functools

import jax
import jax.numpy as jnp
from jax.experimental import pallas as pl
from jax.experimental.pallas import tpu as pltpu


# ----------------------------------------------------------------------------
# Tile-size selection helpers
# ----------------------------------------------------------------------------
def _pick_tile(dim, candidates):
    """Largest candidate that evenly divides `dim`, else the full dim."""
    for c in candidates:
        if dim % c == 0:
            return c
    return dim


_M_TILES = (512, 256, 128, 64, 32, 16, 8)   # sublane axis: multiples of 8
_LANE_TILES = (512, 256, 128)               # lane axis: multiples of 128


# ----------------------------------------------------------------------------
# Pallas kernels
# ----------------------------------------------------------------------------
def _mm_kernel(x_ref, w_ref, o_ref, acc_ref):
    """Tiled matmul, bf16 in / f32 accumulate / bf16 out."""
    @pl.when(pl.program_id(2) == 0)
    def _():
        acc_ref[...] = jnp.zeros_like(acc_ref)

    acc_ref[...] += jnp.dot(x_ref[...], w_ref[...],
                            preferred_element_type=jnp.float32)

    @pl.when(pl.program_id(2) == pl.num_programs(2) - 1)
    def _():
        o_ref[...] = acc_ref[...].astype(o_ref.dtype)


def _mm_bias_relu_kernel(x_ref, w_ref, b_ref, o_ref, acc_ref):
    """Tiled matmul + bias + ReLU epilogue (FFN up-projection)."""
    @pl.when(pl.program_id(2) == 0)
    def _():
        acc_ref[...] = jnp.zeros_like(acc_ref)

    acc_ref[...] += jnp.dot(x_ref[...], w_ref[...],
                            preferred_element_type=jnp.float32)

    @pl.when(pl.program_id(2) == pl.num_programs(2) - 1)
    def _():
        y = acc_ref[...] + b_ref[...]
        o_ref[...] = jnp.maximum(y, 0.0).astype(o_ref.dtype)


def _mm_bias_res_ln_kernel(x_ref, w_ref, b_ref, r_ref, g_ref, be_ref,
                           o_ref, acc_ref):
    """Tiled matmul + bias + residual add + LayerNorm epilogue.

    Grid is (Mt, Kt); N (= embed dim) is kept whole in one block so the
    LayerNorm reduction over the feature axis stays inside the tile.
    """
    k = pl.program_id(1)

    @pl.when(k == 0)
    def _():
        acc_ref[...] = jnp.zeros_like(acc_ref)

    acc_ref[...] += jnp.dot(x_ref[...], w_ref[...],
                            preferred_element_type=jnp.float32)

    @pl.when(k == pl.num_programs(1) - 1)
    def _():
        y = acc_ref[...] + b_ref[...] + r_ref[...].astype(jnp.float32)
        mu = jnp.mean(y, axis=-1, keepdims=True)
        var = jnp.mean((y - mu) * (y - mu), axis=-1, keepdims=True)
        yhat = (y - mu) * jax.lax.rsqrt(var + jnp.float32(1e-5))
        o_ref[...] = (yhat * g_ref[...] + be_ref[...]).astype(o_ref.dtype)


def _attention_body(q_ref, k_ref, v_ref, m_ref, o_ref, heads, head_dim, scale):
    """One batch row: q/k/v blocks are (S, D) lane-dense; loop over heads."""
    q = q_ref[0]                       # (Sq, D) bf16
    k = k_ref[0]                       # (Sk, D) bf16
    v = v_ref[0]                       # (Sk, D) bf16
    if m_ref is not None:
        masked_out = (m_ref[0] == 0.0)  # (Sq, Sk) bool

    outs = []
    for h in range(heads):             # static unroll
        sl = slice(h * head_dim, (h + 1) * head_dim)
        qh = q[:, sl]
        kh = k[:, sl]
        vh = v[:, sl]
        s = jnp.dot(qh, kh.T, preferred_element_type=jnp.float32)   # (Sq, Sk)
        if m_ref is not None:
            s = jnp.where(masked_out, jnp.float32(-1e20), s)        # masked_fill
        s = s * jnp.float32(scale)
        s = s - jnp.max(s, axis=-1, keepdims=True)
        p = jnp.exp(s)
        p = p * pl.reciprocal(jnp.sum(p, axis=-1, keepdims=True), approx=True)
        outs.append(jnp.dot(p.astype(vh.dtype), vh,
                            preferred_element_type=jnp.float32))
    # Single lane-dense store of the concatenated heads.
    o_ref[0] = jnp.concatenate(outs, axis=-1).astype(o_ref.dtype)


@functools.lru_cache(maxsize=None)
def _make_attention_kernel(heads, head_dim, masked):
    scale = 1.0 / math.sqrt(head_dim)
    if masked:
        def kernel(q_ref, k_ref, v_ref, m_ref, o_ref):
            _attention_body(q_ref, k_ref, v_ref, m_ref, o_ref,
                            heads, head_dim, scale)
    else:
        def kernel(q_ref, k_ref, v_ref, o_ref):
            _attention_body(q_ref, k_ref, v_ref, None, o_ref,
                            heads, head_dim, scale)
    return kernel


# ----------------------------------------------------------------------------
# Pallas wrappers
# ----------------------------------------------------------------------------
def pallas_matmul(x, w):
    M, K = x.shape
    N = w.shape[1]
    tm = _pick_tile(M, _M_TILES)
    tn = _pick_tile(N, _LANE_TILES)
    tk = _pick_tile(K, _LANE_TILES)
    return pl.pallas_call(
        _mm_kernel,
        out_shape=jax.ShapeDtypeStruct((M, N), jnp.bfloat16),
        grid=(M // tm, N // tn, K // tk),
        in_specs=[pl.BlockSpec((tm, tk), lambda i, j, k: (i, k)),
                  pl.BlockSpec((tk, tn), lambda i, j, k: (k, j))],
        out_specs=pl.BlockSpec((tm, tn), lambda i, j, k: (i, j)),
        scratch_shapes=[pltpu.VMEM((tm, tn), jnp.float32)],
        compiler_params=pltpu.CompilerParams(
            dimension_semantics=("parallel", "parallel", "arbitrary")),
    )(x, w)


def pallas_matmul_bias_relu(x, w, b):
    M, K = x.shape
    N = w.shape[1]
    tm = _pick_tile(M, _M_TILES)
    tn = _pick_tile(N, _LANE_TILES)
    tk = _pick_tile(K, _LANE_TILES)
    return pl.pallas_call(
        _mm_bias_relu_kernel,
        out_shape=jax.ShapeDtypeStruct((M, N), jnp.bfloat16),
        grid=(M // tm, N // tn, K // tk),
        in_specs=[pl.BlockSpec((tm, tk), lambda i, j, k: (i, k)),
                  pl.BlockSpec((tk, tn), lambda i, j, k: (k, j)),
                  pl.BlockSpec((1, tn), lambda i, j, k: (0, j))],
        out_specs=pl.BlockSpec((tm, tn), lambda i, j, k: (i, j)),
        scratch_shapes=[pltpu.VMEM((tm, tn), jnp.float32)],
        compiler_params=pltpu.CompilerParams(
            dimension_semantics=("parallel", "parallel", "arbitrary")),
    )(x, w, b)


def pallas_matmul_bias_res_ln(x, w, b, res, gamma, beta):
    """out = LayerNorm(x @ w + b + res) * gamma + beta  (N kept whole)."""
    M, K = x.shape
    N = w.shape[1]
    tm = _pick_tile(M, _M_TILES)
    tk = _pick_tile(K, _LANE_TILES)
    return pl.pallas_call(
        _mm_bias_res_ln_kernel,
        out_shape=jax.ShapeDtypeStruct((M, N), jnp.bfloat16),
        grid=(M // tm, K // tk),
        in_specs=[pl.BlockSpec((tm, tk), lambda i, k: (i, k)),
                  pl.BlockSpec((tk, N), lambda i, k: (k, 0)),
                  pl.BlockSpec((1, N), lambda i, k: (0, 0)),
                  pl.BlockSpec((tm, N), lambda i, k: (i, 0)),
                  pl.BlockSpec((1, N), lambda i, k: (0, 0)),
                  pl.BlockSpec((1, N), lambda i, k: (0, 0))],
        out_specs=pl.BlockSpec((tm, N), lambda i, k: (i, 0)),
        scratch_shapes=[pltpu.VMEM((tm, N), jnp.float32)],
        compiler_params=pltpu.CompilerParams(
            dimension_semantics=("parallel", "arbitrary")),
    )(x, w, b, res, gamma, beta)


def pallas_attention(q, k, v, mask, heads):
    """q/k/v: (B, S, D) bf16 in head-concatenated layout; mask: (B, Sq, Sk) f32 or None."""
    B, Sq, D = q.shape
    Sk = k.shape[1]
    Dh = D // heads
    kernel = _make_attention_kernel(heads, Dh, mask is not None)

    in_specs = [pl.BlockSpec((1, Sq, D), lambda b: (b, 0, 0)),
                pl.BlockSpec((1, Sk, D), lambda b: (b, 0, 0)),
                pl.BlockSpec((1, Sk, D), lambda b: (b, 0, 0))]
    args = [q, k, v]
    if mask is not None:
        in_specs.append(pl.BlockSpec((1, Sq, Sk), lambda b: (b, 0, 0)))
        args.append(mask)

    return pl.pallas_call(
        kernel,
        out_shape=jax.ShapeDtypeStruct((B, Sq, D), jnp.bfloat16),
        grid=(B,),
        in_specs=in_specs,
        out_specs=pl.BlockSpec((1, Sq, D), lambda b: (b, 0, 0)),
        compiler_params=pltpu.CompilerParams(
            dimension_semantics=("parallel",)),
    )(*args)


# ----------------------------------------------------------------------------
# Module forward passes (glue around Pallas kernels)
# ----------------------------------------------------------------------------
def mha_add_norm(p, key_in, query_in, value_in, mask, residual, ln_g, ln_b, heads):
    """out = LayerNorm(MHA(key, query, value, mask) + residual)."""
    B, Sq, D = query_in.shape
    Sk = key_in.shape[1]

    if (key_in is query_in) and (key_in is value_in):
        # fused QKV projection: one (B*S, D) x (D, 3D) block-diagonal matmul
        qkv = pallas_matmul(query_in.reshape(B * Sq, D), p["w_qkv_bd"])
        q = qkv[:, :D].reshape(B, Sq, D)
        k = qkv[:, D:2 * D].reshape(B, Sq, D)
        v = qkv[:, 2 * D:].reshape(B, Sq, D)
    else:
        q = pallas_matmul(query_in.reshape(B * Sq, D), p["wq_bd"]).reshape(B, Sq, D)
        k = pallas_matmul(key_in.reshape(B * Sk, D), p["wk_bd"]).reshape(B, Sk, D)
        v = pallas_matmul(value_in.reshape(B * Sk, D), p["wv_bd"]).reshape(B, Sk, D)

    ctx = pallas_attention(q, k, v, mask, heads)                 # (B, Sq, D)

    out = pallas_matmul_bias_res_ln(
        ctx.reshape(B * Sq, D), p["wo"], p["bo"],
        residual.reshape(B * Sq, D), ln_g, ln_b)
    return out.reshape(B, Sq, D)


def ffn_add_norm(p, x2d):
    """out = LayerNorm(relu(x @ W1 + b1) @ W2 + b2 + x)."""
    h = pallas_matmul_bias_relu(x2d, p["w1"], p["b1"])
    return pallas_matmul_bias_res_ln(h, p["w2"], p["b2"], x2d,
                                     p["ln2_g"], p["ln2_b"])


def decoder_block_forward(p, key_in, query_in, x_in, mask, heads):
    # decoder self-attention + add&norm (dropout == identity)
    value = mha_add_norm(p["self_attn"], x_in, x_in, x_in, mask,
                         residual=x_in, ln_g=p["ln_g"], ln_b=p["ln_b"],
                         heads=heads)
    # transformer block: cross-attention (no mask) + add&norm, then FFN + add&norm
    tb = p["tblock"]
    n1 = mha_add_norm(tb["attn"], key_in, query_in, value, None,
                      residual=value, ln_g=tb["ln1_g"], ln_b=tb["ln1_b"],
                      heads=heads)
    B, S, D = n1.shape
    n2 = ffn_add_norm(tb, n1.reshape(B * S, D))
    return n2.reshape(B, S, D)


def decoder_forward(params, tokens, encoder_output, mask, heads):
    emb = jnp.take(params["embedding"], tokens, axis=0)           # (B, S, D) f32
    D = emb.shape[-1]
    S = emb.shape[1]
    x = emb * jnp.float32(math.sqrt(D)) + params["pe"][None, :S, :]
    x = x.astype(jnp.bfloat16)                                    # dropout -> identity
    enc = encoder_output.astype(jnp.bfloat16)

    mask3 = None
    if mask is not None:
        mask3 = mask[:, 0] if mask.ndim == 4 else mask            # (B, Sq, Sk) f32

    for bp in params["blocks"]:
        x = decoder_block_forward(bp, enc, x, enc, mask3, heads)
    return x.astype(jnp.float32)


# ----------------------------------------------------------------------------
# Deterministic parameter init (weights in bf16, biases / LN params in f32)
# ----------------------------------------------------------------------------
def init_mha(key, D, heads):
    Dh = D // heads
    k = jax.random.split(key, 4)
    wq = 0.1 * jax.random.normal(k[0], (Dh, Dh), jnp.float32)
    wk = 0.1 * jax.random.normal(k[1], (Dh, Dh), jnp.float32)
    wv = 0.1 * jax.random.normal(k[2], (Dh, Dh), jnp.float32)
    wo = 0.1 * jax.random.normal(k[3], (D, D), jnp.float32)
    eye = jnp.eye(heads, dtype=jnp.float32)
    wq_bd = jnp.kron(eye, wq)       # block-diagonal (D, D): shared head weight
    wk_bd = jnp.kron(eye, wk)
    wv_bd = jnp.kron(eye, wv)
    return dict(
        wq_bd=wq_bd.astype(jnp.bfloat16),
        wk_bd=wk_bd.astype(jnp.bfloat16),
        wv_bd=wv_bd.astype(jnp.bfloat16),
        w_qkv_bd=jnp.concatenate([wq_bd, wk_bd, wv_bd], axis=1).astype(jnp.bfloat16),
        wo=wo.astype(jnp.bfloat16),
        bo=jnp.zeros((1, D), jnp.float32),
    )


def init_transformer_block(key, D, heads, expansion):
    k = jax.random.split(key, 3)
    return dict(
        attn=init_mha(k[0], D, heads),
        ln1_g=jnp.ones((1, D), jnp.float32), ln1_b=jnp.zeros((1, D), jnp.float32),
        ln2_g=jnp.ones((1, D), jnp.float32), ln2_b=jnp.zeros((1, D), jnp.float32),
        w1=(0.1 * jax.random.normal(k[1], (D, expansion * D), jnp.float32)
            ).astype(jnp.bfloat16),
        b1=jnp.zeros((1, expansion * D), jnp.float32),
        w2=(0.1 * jax.random.normal(k[2], (expansion * D, D), jnp.float32)
            ).astype(jnp.bfloat16),
        b2=jnp.zeros((1, D), jnp.float32),
    )


def init_decoder_block(key, D, heads, expansion):
    k = jax.random.split(key, 2)
    return dict(
        self_attn=init_mha(k[0], D, heads),
        ln_g=jnp.ones((1, D), jnp.float32), ln_b=jnp.zeros((1, D), jnp.float32),
        tblock=init_transformer_block(k[1], D, heads, expansion),
    )


def make_positional_encoding(seq_len, D):
    pos = jnp.arange(seq_len, dtype=jnp.float32)[:, None]
    i = jnp.arange(0, D, 2, dtype=jnp.float32)
    div = jnp.exp(-(jnp.log(10000.0)) * i / D)
    pe = jnp.zeros((seq_len, D), jnp.float32)
    pe = pe.at[:, 0::2].set(jnp.sin(pos * div))
    pe = pe.at[:, 1::2].set(jnp.cos(pos * div))
    return pe


def init_decoder(key, vocab, seq_len, D, num_blocks, heads, expansion):
    keys = jax.random.split(key, num_blocks + 1)
    return dict(
        embedding=0.1 * jax.random.normal(keys[0], (vocab, D), jnp.float32),
        pe=make_positional_encoding(seq_len, D),
        blocks=[init_decoder_block(keys[i + 1], D, heads, expansion)
                for i in range(num_blocks)],
    )


# ----------------------------------------------------------------------------
if __name__ == "__main__":
    B, S, D = 2, 8, 32
    HEADS = 4
    EXPANSION = 4
    NUM_BLOCKS = 2
    VOCAB = 50

    root = jax.random.PRNGKey(0)
    k_param, k_tok, k_enc = jax.random.split(root, 3)

    params = init_decoder(k_param, VOCAB, S, D, NUM_BLOCKS, HEADS, EXPANSION)

    tokens = jax.random.randint(k_tok, (B, S), 0, VOCAB, dtype=jnp.int32)
    encoder_output = jax.random.normal(k_enc, (B, S, D), jnp.float32)
    # causal target mask, broadcast over heads: (B, 1, S, S)
    tri = jnp.tril(jnp.ones((S, S), jnp.float32))
    mask = jnp.broadcast_to(tri[None, None, :, :], (B, 1, S, S))

    fwd = jax.jit(decoder_forward, static_argnames=("heads",))
    out = fwd(params, tokens, encoder_output, mask, heads=HEADS)
    out = jax.block_until_ready(out)

    assert out.shape == (B, S, D) and out.dtype == jnp.float32
    assert bool(jnp.all(jnp.isfinite(out)))
    print("KERNEL_OK")
</pallas_src>

<mosaic_0001>
module attributes {stable_mosaic.version = 11 : i64} {
  func.func @_mm_kernel(%arg0: i32, %arg1: i32, %arg2: i32, %arg3: memref<16x32xbf16, #tpu.memory_space<vmem>>, %arg4: memref<32x96xbf16, #tpu.memory_space<vmem>>, %arg5: memref<16x96xbf16, #tpu.memory_space<vmem>>, %arg6: memref<16x96xf32, #tpu.memory_space<vmem>>) attributes {dimension_semantics = [#tpu.dimension_semantics<parallel>, #tpu.dimension_semantics<parallel>, #tpu.dimension_semantics<arbitrary>], iteration_bounds = array<i64: 1, 1, 1>, scalar_prefetch = 0 : i64, scratch_operands = 1 : i64, tpu.core_type = #tpu.core_type<tc>, window_params = [{transform_indices = @transform_0, window_bounds = array<i64: 16, 32>}, {transform_indices = @transform_1, window_bounds = array<i64: 32, 96>}, {transform_indices = @transform_2, window_bounds = array<i64: 16, 96>}]} {
    %c0_i32 = arith.constant 0 : i32
    %0 = arith.cmpi eq, %arg2, %c0_i32 : i32
    %1 = arith.extui %0 : i1 to i32
    %c0_i32_0 = arith.constant 0 : i32
    %2 = arith.cmpi ne, %1, %c0_i32_0 : i32
    scf.if %2 {
      %cst_10 = arith.constant 0.000000e+00 : f32
      %12 = vector.broadcast %cst_10 : f32 to vector<16x96xf32>
      %c0_11 = arith.constant 0 : index
      %c0_12 = arith.constant 0 : index
      %13 = vector.load %arg6[%c0_11, %c0_12] : memref<16x96xf32, #tpu.memory_space<vmem>>, vector<16x96xf32>
      tpu.vector_store %arg6[%c0_11, %c0_12], %12 {strides = array<i32>} : memref<16x96xf32, #tpu.memory_space<vmem>>, vector<16x96xf32>,
    } else {
    }
    %c0 = arith.constant 0 : index
    %c0_1 = arith.constant 0 : index
    %3 = vector.load %arg6[%c0, %c0_1] : memref<16x96xf32, #tpu.memory_space<vmem>>, vector<16x96xf32>
    %c0_2 = arith.constant 0 : index
    %c0_3 = arith.constant 0 : index
    %4 = vector.load %arg3[%c0_2, %c0_3] : memref<16x32xbf16, #tpu.memory_space<vmem>>, vector<16x32xbf16>
    %c0_4 = arith.constant 0 : index
    %c0_5 = arith.constant 0 : index
    %5 = vector.load %arg4[%c0_4, %c0_5] : memref<32x96xbf16, #tpu.memory_space<vmem>>, vector<32x96xbf16>
    %cst = arith.constant dense<0.000000e+00> : vector<16x96xf32>
    %6 = tpu.matmul %4, %5, %cst {dimension_numbers = #tpu.dot_dimension_numbers<[1], [0], [0], [1], [0, 0, 1, 1], [], []>} : vector<16x32xbf16>, vector<32x96xbf16>, vector<16x96xf32> -> vector<16x96xf32>
    %7 = arith.addf %3, %6 : vector<16x96xf32>
    %c0_6 = arith.constant 0 : index
    %c0_7 = arith.constant 0 : index
    %8 = vector.load %arg6[%c0_6, %c0_7] : memref<16x96xf32, #tpu.memory_space<vmem>>, vector<16x96xf32>
    tpu.vector_store %arg6[%c0_6, %c0_7], %7 {strides = array<i32>} : memref<16x96xf32, #tpu.memory_space<vmem>>, vector<16x96xf32>,
    %c0_i32_8 = arith.constant 0 : i32
    %9 = arith.cmpi eq, %arg2, %c0_i32_8 : i32
    %10 = arith.extui %9 : i1 to i32
    %c0_i32_9 = arith.constant 0 : i32
    %11 = arith.cmpi ne, %10, %c0_i32_9 : i32
    scf.if %11 {
      %c0_10 = arith.constant 0 : index
      %c0_11 = arith.constant 0 : index
      %12 = vector.load %arg6[%c0_10, %c0_11] : memref<16x96xf32, #tpu.memory_space<vmem>>, vector<16x96xf32>
      %13 = arith.truncf %12 : vector<16x96xf32> to vector<16x96xbf16>
      %c0_12 = arith.constant 0 : index
      %c0_13 = arith.constant 0 : index
      %14 = vector.load %arg5[%c0_12, %c0_13] : memref<16x96xbf16, #tpu.memory_space<vmem>>, vector<16x96xbf16>
      tpu.vector_store %arg5[%c0_12, %c0_13], %13 {strides = array<i32>} : memref<16x96xbf16, #tpu.memory_space<vmem>>, vector<16x96xbf16>,
    } else {
    }
    return
  }
  func.func @transform_0(%arg0: i32, %arg1: i32, %arg2: i32) -> (i32, i32) {
    %c0_i32 = arith.constant 0 : i32
    return %arg0, %arg2 : i32, i32
  }
  func.func @transform_1(%arg0: i32, %arg1: i32, %arg2: i32) -> (i32, i32) {
    %c0_i32 = arith.constant 0 : i32
    return %arg2, %arg1 : i32, i32
  }
  func.func @transform_2(%arg0: i32, %arg1: i32, %arg2: i32) -> (i32, i32) {
    %c0_i32 = arith.constant 0 : i32
    return %arg0, %arg1 : i32, i32
  }
}

module attributes {stable_mosaic.version = 11 : i64} {
  func.func @_mm_kernel(%arg0: i32, %arg1: i32, %arg2: i32, %arg3: memref<16x32xbf16, #tpu.memory_space<vmem>>, %arg4: memref<32x32xbf16, #tpu.memory_space<vmem>>, %arg5: memref<16x32xbf16, #tpu.memory_space<vmem>>, %arg6: memref<16x32xf32, #tpu.memory_space<vmem>>) attributes {dimension_semantics = [#tpu.dimension_semantics<parallel>, #tpu.dimension_semantics<parallel>, #tpu.dimension_semantics<arbitrary>], iteration_bounds = array<i64: 1, 1, 1>, scalar_prefetch = 0 : i64, scratch_operands = 1 : i64, tpu.core_type = #tpu.core_type<tc>, window_params = [{transform_indices = @transform_0, window_bounds = array<i64: 16, 32>}, {transform_indices = @transform_1, window_bounds = array<i64: 32, 32>}, {transform_indices = @transform_2, window_bounds = array<i64: 16, 32>}]} {
    %c0_i32 = arith.constant 0 : i32
    %0 = arith.cmpi eq, %arg2, %c0_i32 : i32
    %1 = arith.extui %0 : i1 to i32
    %c0_i32_0 = arith.constant 0 : i32
    %2 = arith.cmpi ne, %1, %c0_i32_0 : i32
    scf.if %2 {
      %cst_10 = arith.constant 0.000000e+00 : f32
      %12 = vector.broadcast %cst_10 : f32 to vector<16x32xf32>
      %c0_11 = arith.constant 0 : index
      %c0_12 = arith.constant 0 : index
      %13 = vector.load %arg6[%c0_11, %c0_12] : memref<16x32xf32, #tpu.memory_space<vmem>>, vector<16x32xf32>
      tpu.vector_store %arg6[%c0_11, %c0_12], %12 {strides = array<i32>} : memref<16x32xf32, #tpu.memory_space<vmem>>, vector<16x32xf32>,
    } else {
    }
    %c0 = arith.constant 0 : index
    %c0_1 = arith.constant 0 : index
    %3 = vector.load %arg6[%c0, %c0_1] : memref<16x32xf32, #tpu.memory_space<vmem>>, vector<16x32xf32>
    %c0_2 = arith.constant 0 : index
    %c0_3 = arith.constant 0 : index
    %4 = vector.load %arg3[%c0_2, %c0_3] : memref<16x32xbf16, #tpu.memory_space<vmem>>, vector<16x32xbf16>
    %c0_4 = arith.constant 0 : index
    %c0_5 = arith.constant 0 : index
    %5 = vector.load %arg4[%c0_4, %c0_5] : memref<32x32xbf16, #tpu.memory_space<vmem>>, vector<32x32xbf16>
    %cst = arith.constant dense<0.000000e+00> : vector<16x32xf32>
    %6 = tpu.matmul %4, %5, %cst {dimension_numbers = #tpu.dot_dimension_numbers<[1], [0], [0], [1], [0, 0, 1, 1], [], []>} : vector<16x32xbf16>, vector<32x32xbf16>, vector<16x32xf32> -> vector<16x32xf32>
    %7 = arith.addf %3, %6 : vector<16x32xf32>
    %c0_6 = arith.constant 0 : index
    %c0_7 = arith.constant 0 : index
    %8 = vector.load %arg6[%c0_6, %c0_7] : memref<16x32xf32, #tpu.memory_space<vmem>>, vector<16x32xf32>
    tpu.vector_store %arg6[%c0_6, %c0_7], %7 {strides = array<i32>} : memref<16x32xf32, #tpu.memory_space<vmem>>, vector<16x32xf32>,
    %c0_i32_8 = arith.constant 0 : i32
    %9 = arith.cmpi eq, %arg2, %c0_i32_8 : i32
    %10 = arith.extui %9 : i1 to i32
    %c0_i32_9 = arith.constant 0 : i32
    %11 = arith.cmpi ne, %10, %c0_i32_9 : i32
    scf.if %11 {
      %c0_10 = arith.constant 0 : index
      %c0_11 = arith.constant 0 : index
      %12 = vector.load %arg6[%c0_10, %c0_11] : memref<16x32xf32, #tpu.memory_space<vmem>>, vector<16x32xf32>
      %13 = arith.truncf %12 : vector<16x32xf32> to vector<16x32xbf16>
      %c0_12 = arith.constant 0 : index
      %c0_13 = arith.constant 0 : index
      %14 = vector.load %arg5[%c0_12, %c0_13] : memref<16x32xbf16, #tpu.memory_space<vmem>>, vector<16x32xbf16>
      tpu.vector_store %arg5[%c0_12, %c0_13], %13 {strides = array<i32>} : memref<16x32xbf16, #tpu.memory_space<vmem>>, vector<16x32xbf16>,
    } else {
    }
    return
  }
  func.func @transform_0(%arg0: i32, %arg1: i32, %arg2: i32) -> (i32, i32) {
    %c0_i32 = arith.constant 0 : i32
    return %arg0, %arg2 : i32, i32
  }
  func.func @transform_1(%arg0: i32, %arg1: i32, %arg2: i32) -> (i32, i32) {
    %c0_i32 = arith.constant 0 : i32
    return %arg2, %arg1 : i32, i32
  }
  func.func @transform_2(%arg0: i32, %arg1: i32, %arg2: i32) -> (i32, i32) {
    %c0_i32 = arith.constant 0 : i32
    return %arg0, %arg1 : i32, i32
  }
}

module attributes {stable_mosaic.version = 11 : i64} {
  func.func @_mm_bias_res_ln_kernel(%arg0: i32, %arg1: i32, %arg2: memref<16x32xbf16, #tpu.memory_space<vmem>>, %arg3: memref<32x32xbf16, #tpu.memory_space<vmem>>, %arg4: memref<1x32xf32, #tpu.memory_space<vmem>>, %arg5: memref<16x32xbf16, #tpu.memory_space<vmem>>, %arg6: memref<1x32xf32, #tpu.memory_space<vmem>>, %arg7: memref<1x32xf32, #tpu.memory_space<vmem>>, %arg8: memref<16x32xbf16, #tpu.memory_space<vmem>>, %arg9: memref<16x32xf32, #tpu.memory_space<vmem>>) attributes {dimension_semantics = [#tpu.dimension_semantics<parallel>, #tpu.dimension_semantics<arbitrary>], iteration_bounds = array<i64: 1, 1>, scalar_prefetch = 0 : i64, scratch_operands = 1 : i64, tpu.core_type = #tpu.core_type<tc>, window_params = [{transform_indices = @transform_0, window_bounds = array<i64: 16, 32>}, {transform_indices = @transform_1, window_bounds = array<i64: 32, 32>}, {pipeline_mode = #tpu.pipeline_mode<synchronous>, transform_indices = @transform_2, window_bounds = array<i64: 1, 32>}, {transform_indices = @transform_3, window_bounds = array<i64: 16, 32>}, {pipeline_mode = #tpu.pipeline_mode<synchronous>, transform_indices = @transform_4, window_bounds = array<i64: 1, 32>}, {pipeline_mode = #tpu.pipeline_mode<synchronous>, transform_indices = @transform_5, window_bounds = array<i64: 1, 32>}, {transform_indices = @transform_6, window_bounds = array<i64: 16, 32>}]} {
    %c0_i32 = arith.constant 0 : i32
    %0 = arith.cmpi eq, %arg1, %c0_i32 : i32
    %1 = arith.extui %0 : i1 to i32
    %c0_i32_0 = arith.constant 0 : i32
    %2 = arith.cmpi ne, %1, %c0_i32_0 : i32
    scf.if %2 {
      %cst_10 = arith.constant 0.000000e+00 : f32
      %12 = vector.broadcast %cst_10 : f32 to vector<16x32xf32>
      %c0_11 = arith.constant 0 : index
      %c0_12 = arith.constant 0 : index
      %13 = vector.load %arg9[%c0_11, %c0_12] : memref<16x32xf32, #tpu.memory_space<vmem>>, vector<16x32xf32>
      tpu.vector_store %arg9[%c0_11, %c0_12], %12 {strides = array<i32>} : memref<16x32xf32, #tpu.memory_space<vmem>>, vector<16x32xf32>,
    } else {
    }
    %c0 = arith.constant 0 : index
    %c0_1 = arith.constant 0 : index
    %3 = vector.load %arg9[%c0, %c0_1] : memref<16x32xf32, #tpu.memory_space<vmem>>, vector<16x32xf32>
    %c0_2 = arith.constant 0 : index
    %c0_3 = arith.constant 0 : index
    %4 = vector.load %arg2[%c0_2, %c0_3] : memref<16x32xbf16, #tpu.memory_space<vmem>>, vector<16x32xbf16>
    %c0_4 = arith.constant 0 : index
    %c0_5 = arith.constant 0 : index
    %5 = vector.load %arg3[%c0_4, %c0_5] : memref<32x32xbf16, #tpu.memory_space<vmem>>, vector<32x32xbf16>
    %cst = arith.constant dense<0.000000e+00> : vector<16x32xf32>
    %6 = tpu.matmul %4, %5, %cst {dimension_numbers = #tpu.dot_dimension_numbers<[1], [0], [0], [1], [0, 0, 1, 1], [], []>} : vector<16x32xbf16>, vector<32x32xbf16>, vector<16x32xf32> -> vector<16x32xf32>
    %7 = arith.addf %3, %6 : vector<16x32xf32>
    %c0_6 = arith.constant 0 : index
    %c0_7 = arith.constant 0 : index
    %8 = vector.load %arg9[%c0_6, %c0_7] : memref<16x32xf32, #tpu.memory_space<vmem>>, vector<16x32xf32>
    tpu.vector_store %arg9[%c0_6, %c0_7], %7 {strides = array<i32>} : memref<16x32xf32, #tpu.memory_space<vmem>>, vector<16x32xf32>,
    %c0_i32_8 = arith.constant 0 : i32
    %9 = arith.cmpi eq, %arg1, %c0_i32_8 : i32
    %10 = arith.extui %9 : i1 to i32
    %c0_i32_9 = arith.constant 0 : i32
    %11 = arith.cmpi ne, %10, %c0_i32_9 : i32
    scf.if %11 {
      %c0_10 = arith.constant 0 : index
      %c0_11 = arith.constant 0 : index
      %12 = vector.load %arg9[%c0_10, %c0_11] : memref<16x32xf32, #tpu.memory_space<vmem>>, vector<16x32xf32>
      %c0_12 = arith.constant 0 : index
      %c0_13 = arith.constant 0 : index
      %13 = vector.load %arg4[%c0_12, %c0_13] : memref<1x32xf32, #tpu.memory_space<vmem>>, vector<1x32xf32>
      %14 = vector.broadcast %13 : vector<1x32xf32> to vector<16x32xf32>
      %15 = arith.addf %12, %14 : vector<16x32xf32>
      %c0_14 = arith.constant 0 : index
      %c0_15 = arith.constant 0 : index
      %16 = vector.load %arg5[%c0_14, %c0_15] : memref<16x32xbf16, #tpu.memory_space<vmem>>, vector<16x32xbf16>
      %17 = arith.extf %16 : vector<16x32xbf16> to vector<16x32xf32>
      %18 = arith.addf %15, %17 : vector<16x32xf32>
      %cst_16 = arith.constant dense<0.000000e+00> : vector<16xf32>
      %19 = vector.multi_reduction <add>, %18, %cst_16 [1] : vector<16x32xf32> to vector<16xf32>
      %20 = vector.shape_cast %19 : vector<16xf32> to vector<16x1xf32>
      %cst_17 = arith.constant 3.200000e+01 : f32
      %21 = vector.broadcast %cst_17 : f32 to vector<16x1xf32>
      %22 = arith.divf %20, %21 : vector<16x1xf32>
      %23 = vector.broadcast %22 : vector<16x1xf32> to vector<16x32xf32>
      %24 = arith.subf %18, %23 : vector<16x32xf32>
      %25 = vector.broadcast %22 : vector<16x1xf32> to vector<16x32xf32>
      %26 = arith.subf %18, %25 : vector<16x32xf32>
      %27 = arith.mulf %24, %26 : vector<16x32xf32>
      %cst_18 = arith.constant dense<0.000000e+00> : vector<16xf32>
      %28 = vector.multi_reduction <add>, %27, %cst_18 [1] : vector<16x32xf32> to vector<16xf32>
      %29 = vector.shape_cast %28 : vector<16xf32> to vector<16x1xf32>
      %cst_19 = arith.constant 3.200000e+01 : f32
      %30 = vector.broadcast %cst_19 : f32 to vector<16x1xf32>
      %31 = arith.divf %29, %30 : vector<16x1xf32>
      %32 = vector.broadcast %22 : vector<16x1xf32> to vector<16x32xf32>
      %33 = arith.subf %18, %32 : vector<16x32xf32>
      %cst_20 = arith.constant 9.99999974E-6 : f32
      %34 = vector.broadcast %cst_20 : f32 to vector<16x1xf32>
      %35 = arith.addf %31, %34 : vector<16x1xf32>
      %36 = math.rsqrt %35 : vector<16x1xf32>
      %37 = vector.broadcast %36 : vector<16x1xf32> to vector<16x32xf32>
      %38 = arith.mulf %33, %37 : vector<16x32xf32>
      %c0_21 = arith.constant 0 : index
      %c0_22 = arith.constant 0 : index
      %39 = vector.load %arg6[%c0_21, %c0_22] : memref<1x32xf32, #tpu.memory_space<vmem>>, vector<1x32xf32>
      %40 = vector.broadcast %39 : vector<1x32xf32> to vector<16x32xf32>
      %41 = arith.mulf %38, %40 : vector<16x32xf32>
      %c0_23 = arith.constant 0 : index
      %c0_24 = arith.constant 0 : index
      %42 = vector.load %arg7[%c0_23, %c0_24] : memref<1x32xf32, #tpu.memory_space<vmem>>, vector<1x32xf32>
      %43 = vector.broadcast %42 : vector<1x32xf32> to vector<16x32xf32>
      %44 = arith.addf %41, %43 : vector<16x32xf32>
      %45 = arith.truncf %44 : vector<16x32xf32> to vector<16x32xbf16>
      %c0_25 = arith.constant 0 : index
      %c0_26 = arith.constant 0 : index
      %46 = vector.load %arg8[%c0_25, %c0_26] : memref<16x32xbf16, #tpu.memory_space<vmem>>, vector<16x32xbf16>
      tpu.vector_store %arg8[%c0_25, %c0_26], %45 {strides = array<i32>} : memref<16x32xbf16, #tpu.memory_space<vmem>>, vector<16x32xbf16>,
    } else {
    }
    return
  }
  func.func @transform_0(%arg0: i32, %arg1: i32) -> (i32, i32) {
    %c0_i32 = arith.constant 0 : i32
    return %arg0, %arg1 : i32, i32
  }
  func.func @transform_1(%arg0: i32, %arg1: i32) -> (i32, i32) {
    %c0_i32 = arith.constant 0 : i32
    %c0_i32_0 = arith.constant 0 : i32
    return %arg1, %c0_i32 : i32, i32
  }
  func.func @transform_2(%arg0: i32, %arg1: i32) -> (i32, i32) {
    %c0_i32 = arith.constant 0 : i32
    %c0_i32_0 = arith.constant 0 : i32
    %c0_i32_1 = arith.constant 0 : i32
    return %c0_i32, %c0_i32_0 : i32, i32
  }
  func.func @transform_3(%arg0: i32, %arg1: i32) -> (i32, i32) {
    %c0_i32 = arith.constant 0 : i32
    %c0_i32_0 = arith.constant 0 : i32
    return %arg0, %c0_i32 : i32, i32
  }
  func.func @transform_4(%arg0: i32, %arg1: i32) -> (i32, i32) {
    %c0_i32 = arith.constant 0 : i32
    %c0_i32_0 = arith.constant 0 : i32
    %c0_i32_1 = arith.constant 0 : i32
    return %c0_i32, %c0_i32_0 : i32, i32
  }
  func.func @transform_5(%arg0: i32, %arg1: i32) -> (i32, i32) {
    %c0_i32 = arith.constant 0 : i32
    %c0_i32_0 = arith.constant 0 : i32
    %c0_i32_1 = arith.constant 0 : i32
    return %c0_i32, %c0_i32_0 : i32, i32
  }
  func.func @transform_6(%arg0: i32, %arg1: i32) -> (i32, i32) {
    %c0_i32 = arith.constant 0 : i32
    %c0_i32_0 = arith.constant 0 : i32
    return %arg0, %c0_i32 : i32, i32
  }
}

module attributes {stable_mosaic.version = 11 : i64} {
  func.func @kernel(%arg0: i32, %arg1: memref<1x8x32xbf16, #tpu.memory_space<vmem>>, %arg2: memref<1x8x32xbf16, #tpu.memory_space<vmem>>, %arg3: memref<1x8x32xbf16, #tpu.memory_space<vmem>>, %arg4: memref<1x8x8xf32, #tpu.memory_space<vmem>>, %arg5: memref<1x8x32xbf16, #tpu.memory_space<vmem>>) attributes {dimension_semantics = [#tpu.dimension_semantics<parallel>], iteration_bounds = array<i64: 2>, scalar_prefetch = 0 : i64, scratch_operands = 0 : i64, tpu.core_type = #tpu.core_type<tc>, window_params = [{transform_indices = @transform_0, window_bounds = array<i64: 1, 8, 32>}, {transform_indices = @transform_1, window_bounds = array<i64: 1, 8, 32>}, {transform_indices = @transform_2, window_bounds = array<i64: 1, 8, 32>}, {transform_indices = @transform_3, window_bounds = array<i64: 1, 8, 8>}, {transform_indices = @transform_4, window_bounds = array<i64: 1, 8, 32>}]} {
    %c0 = arith.constant 0 : index
    %c0_0 = arith.constant 0 : index
    %c0_1 = arith.constant 0 : index
    %0 = vector.load %arg1[%c0, %c0_0, %c0_1] : memref<1x8x32xbf16, #tpu.memory_space<vmem>>, vector<1x8x32xbf16>
    %1 = vector.shape_cast %0 : vector<1x8x32xbf16> to vector<8x32xbf16>
    %c0_2 = arith.constant 0 : index
    %c0_3 = arith.constant 0 : index
    %c0_4 = arith.constant 0 : index
    %2 = vector.load %arg2[%c0_2, %c0_3, %c0_4] : memref<1x8x32xbf16, #tpu.memory_space<vmem>>, vector<1x8x32xbf16>
    %3 = vector.shape_cast %2 : vector<1x8x32xbf16> to vector<8x32xbf16>
    %c0_5 = arith.constant 0 : index
    %c0_6 = arith.constant 0 : index
    %c0_7 = arith.constant 0 : index
    %4 = vector.load %arg3[%c0_5, %c0_6, %c0_7] : memref<1x8x32xbf16, #tpu.memory_space<vmem>>, vector<1x8x32xbf16>
    %5 = vector.shape_cast %4 : vector<1x8x32xbf16> to vector<8x32xbf16>
    %c0_8 = arith.constant 0 : index
    %c0_9 = arith.constant 0 : index
    %c0_10 = arith.constant 0 : index
    %6 = vector.load %arg4[%c0_8, %c0_9, %c0_10] : memref<1x8x8xf32, #tpu.memory_space<vmem>>, vector<1x8x8xf32>
    %7 = vector.shape_cast %6 : vector<1x8x8xf32> to vector<8x8xf32>
    %cst = arith.constant 0.000000e+00 : f32
    %8 = vector.broadcast %cst : f32 to vector<8x8xf32>
    %9 = arith.cmpf oeq, %7, %8 : vector<8x8xf32>
    %10 = vector.extract_strided_slice %1 {offsets = [0, 0], sizes = [8, 8], strides = [1, 1]} : vector<8x32xbf16> to vector<8x8xbf16>
    %11 = vector.extract_strided_slice %3 {offsets = [0, 0], sizes = [8, 8], strides = [1, 1]} : vector<8x32xbf16> to vector<8x8xbf16>
    %12 = vector.extract_strided_slice %5 {offsets = [0, 0], sizes = [8, 8], strides = [1, 1]} : vector<8x32xbf16> to vector<8x8xbf16>
    %13 = tpu.transpose %11, [1, 0] : vector<8x8xbf16> -> vector<8x8xbf16>
    %cst_11 = arith.constant dense<0.000000e+00> : vector<8x8xf32>
    %14 = tpu.matmul %10, %13, %cst_11 {dimension_numbers = #tpu.dot_dimension_numbers<[1], [0], [0], [1], [0, 0, 1, 1], [], []>} : vector<8x8xbf16>, vector<8x8xbf16>, vector<8x8xf32> -> vector<8x8xf32>
    %cst_12 = arith.constant -1.000000e+20 : f32
    %15 = vector.broadcast %cst_12 : f32 to vector<8x8xf32>
    %16 = arith.select %9, %15, %14 : vector<8x8xi1>, vector<8x8xf32>
    %cst_13 = arith.constant 0.353553385 : f32
    %17 = vector.broadcast %cst_13 : f32 to vector<8x8xf32>
    %18 = arith.mulf %16, %17 : vector<8x8xf32>
    %cst_14 = arith.constant dense<0xFF800000> : vector<8xf32>
    %19 = vector.multi_reduction <maximumf>, %18, %cst_14 [1] : vector<8x8xf32> to vector<8xf32>
    %20 = vector.shape_cast %19 : vector<8xf32> to vector<8x1xf32>
    %21 = vector.broadcast %20 : vector<8x1xf32> to vector<8x8xf32>
    %22 = arith.subf %18, %21 : vector<8x8xf32>
    %23 = math.exp %22 : vector<8x8xf32>
    %cst_15 = arith.constant dense<0.000000e+00> : vector<8xf32>
    %24 = vector.multi_reduction <add>, %23, %cst_15 [1] : vector<8x8xf32> to vector<8xf32>
    %25 = vector.shape_cast %24 : vector<8xf32> to vector<8x1xf32>
    %26 = tpu.reciprocal %25 {approx = true} : vector<8x1xf32> -> vector<8x1xf32>
    %27 = vector.broadcast %26 : vector<8x1xf32> to vector<8x8xf32>
    %28 = arith.mulf %23, %27 : vector<8x8xf32>
    %29 = arith.truncf %28 : vector<8x8xf32> to vector<8x8xbf16>
    %cst_16 = arith.constant dense<0.000000e+00> : vector<8x8xf32>
    %30 = tpu.matmul %29, %12, %cst_16 {dimension_numbers = #tpu.dot_dimension_numbers<[1], [0], [0], [1], [0, 0, 1, 1], [], []>} : vector<8x8xbf16>, vector<8x8xbf16>, vector<8x8xf32> -> vector<8x8xf32>
    %31 = vector.extract_strided_slice %1 {offsets = [0, 8], sizes = [8, 8], strides = [1, 1]} : vector<8x32xbf16> to vector<8x8xbf16>
    %32 = vector.extract_strided_slice %3 {offsets = [0, 8], sizes = [8, 8], strides = [1, 1]} : vector<8x32xbf16> to vector<8x8xbf16>
    %33 = vector.extract_strided_slice %5 {offsets = [0, 8], sizes = [8, 8], strides = [1, 1]} : vector<8x32xbf16> to vector<8x8xbf16>
    %34 = tpu.transpose %32, [1, 0] : vector<8x8xbf16> -> vector<8x8xbf16>
    %cst_17 = arith.constant dense<0.000000e+00> : vector<8x8xf32>
    %35 = tpu.matmul %31, %34, %cst_17 {dimension_numbers = #tpu.dot_dimension_numbers<[1], [0], [0], [1], [0, 0, 1, 1], [], []>} : vector<8x8xbf16>, vector<8x8xbf16>, vector<8x8xf32> -> vector<8x8xf32>
    %cst_18 = arith.constant -1.000000e+20 : f32
    %36 = vector.broadcast %cst_18 : f32 to vector<8x8xf32>
    %37 = arith.select %9, %36, %35 : vector<8x8xi1>, vector<8x8xf32>
    %cst_19 = arith.constant 0.353553385 : f32
    %38 = vector.broadcast %cst_19 : f32 to vector<8x8xf32>
    %39 = arith.mulf %37, %38 : vector<8x8xf32>
    %cst_20 = arith.constant dense<0xFF800000> : vector<8xf32>
    %40 = vector.multi_reduction <maximumf>, %39, %cst_20 [1] : vector<8x8xf32> to vector<8xf32>
    %41 = vector.shape_cast %40 : vector<8xf32> to vector<8x1xf32>
    %42 = vector.broadcast %41 : vector<8x1xf32> to vector<8x8xf32>
    %43 = arith.subf %39, %42 : vector<8x8xf32>
    %44 = math.exp %43 : vector<8x8xf32>
    %cst_21 = arith.constant dense<0.000000e+00> : vector<8xf32>
    %45 = vector.multi_reduction <add>, %44, %cst_21 [1] : vector<8x8xf32> to vector<8xf32>
    %46 = vector.shape_cast %45 : vector<8xf32> to vector<8x1xf32>
    %47 = tpu.reciprocal %46 {approx = true} : vector<8x1xf32> -> vector<8x1xf32>
    %48 = vector.broadcast %47 : vector<8x1xf32> to vector<8x8xf32>
    %49 = arith.mulf %44, %48 : vector<8x8xf32>
    %50 = arith.truncf %49 : vector<8x8xf32> to vector<8x8xbf16>
    %cst_22 = arith.constant dense<0.000000e+00> : vector<8x8xf32>
    %51 = tpu.matmul %50, %33, %cst_22 {dimension_numbers = #tpu.dot_dimension_numbers<[1], [0], [0], [1], [0, 0, 1, 1], [], []>} : vector<8x8xbf16>, vector<8x8xbf16>, vector<8x8xf32> -> vector<8x8xf32>
    %52 = vector.extract_strided_slice %1 {offsets = [0, 16], sizes = [8, 8], strides = [1, 1]} : vector<8x32xbf16> to vector<8x8xbf16>
    %53 = vector.extract_strided_slice %3 {offsets = [0, 16], sizes = [8, 8], strides = [1, 1]} : vector<8x32xbf16> to vector<8x8xbf16>
    %54 = vector.extract_strided_slice %5 {offsets = [0, 16], sizes = [8, 8], strides = [1, 1]} : vector<8x32xbf16> to vector<8x8xbf16>
    %55 = tpu.transpose %53, [1, 0] : vector<8x8xbf16> -> vector<8x8xbf16>
    %cst_23 = arith.constant dense<0.000000e+00> : vector<8x8xf32>
    %56 = tpu.matmul %52, %55, %cst_23 {dimension_numbers = #tpu.dot_dimension_numbers<[1], [0], [0], [1], [0, 0, 1, 1], [], []>} : vector<8x8xbf16>, vector<8x8xbf16>, vector<8x8xf32> -> vector<8x8xf32>
    %cst_24 = arith.constant -1.000000e+20 : f32
    %57 = vector.broadcast %cst_24 : f32 to vector<8x8xf32>
    %58 = arith.select %9, %57, %56 : vector<8x8xi1>, vector<8x8xf32>
    %cst_25 = arith.constant 0.353553385 : f32
    %59 = vector.broadcast %cst_25 : f32 to vector<8x8xf32>
    %60 = arith.mulf %58, %59 : vector<8x8xf32>
    %cst_26 = arith.constant dense<0xFF800000> : vector<8xf32>
    %61 = vector.multi_reduction <maximumf>, %60, %cst_26 [1] : vector<8x8xf32> to vector<8xf32>
    %62 = vector.shape_cast %61 : vector<8xf32> to vector<8x1xf32>
    %63 = vector.broadcast %62 : vector<8x1xf32> to vector<8x8xf32>
    %64 = arith.subf %60, %63 : vector<8x8xf32>
    %65 = math.exp %64 : vector<8x8xf32>
    %cst_27 = arith.constant dense<0.000000e+00> : vector<8xf32>
    %66 = vector.multi_reduction <add>, %65, %cst_27 [1] : vector<8x8xf32> to vector<8xf32>
    %67 = vector.shape_cast %66 : vector<8xf32> to vector<8x1xf32>
    %68 = tpu.reciprocal %67 {approx = true} : vector<8x1xf32> -> vector<8x1xf32>
    %69 = vector.broadcast %68 : vector<8x1xf32> to vector<8x8xf32>
    %70 = arith.mulf %65, %69 : vector<8x8xf32>
    %71 = arith.truncf %70 : vector<8x8xf32> to vector<8x8xbf16>
    %cst_28 = arith.constant dense<0.000000e+00> : vector<8x8xf32>
    %72 = tpu.matmul %71, %54, %cst_28 {dimension_numbers = #tpu.dot_dimension_numbers<[1], [0], [0], [1], [0, 0, 1, 1], [], []>} : vector<8x8xbf16>, vector<8x8xbf16>, vector<8x8xf32> -> vector<8x8xf32>
    %73 = vector.extract_strided_slice %1 {offsets = [0, 24], sizes = [8, 8], strides = [1, 1]} : vector<8x32xbf16> to vector<8x8xbf16>
    %74 = vector.extract_strided_slice %3 {offsets = [0, 24], sizes = [8, 8], strides = [1, 1]} : vector<8x32xbf16> to vector<8x8xbf16>
    %75 = vector.extract_strided_slice %5 {offsets = [0, 24], sizes = [8, 8], strides = [1, 1]} : vector<8x32xbf16> to vector<8x8xbf16>
    %76 = tpu.transpose %74, [1, 0] : vector<8x8xbf16> -> vector<8x8xbf16>
    %cst_29 = arith.constant dense<0.000000e+00> : vector<8x8xf32>
    %77 = tpu.matmul %73, %76, %cst_29 {dimension_numbers = #tpu.dot_dimension_numbers<[1], [0], [0], [1], [0, 0, 1, 1], [], []>} : vector<8x8xbf16>, vector<8x8xbf16>, vector<8x8xf32> -> vector<8x8xf32>
    %cst_30 = arith.constant -1.000000e+20 : f32
    %78 = vector.broadcast %cst_30 : f32 to vector<8x8xf32>
    %79 = arith.select %9, %78, %77 : vector<8x8xi1>, vector<8x8xf32>
    %cst_31 = arith.constant 0.353553385 : f32
    %80 = vector.broadcast %cst_31 : f32 to vector<8x8xf32>
    %81 = arith.mulf %79, %80 : vector<8x8xf32>
    %cst_32 = arith.constant dense<0xFF800000> : vector<8xf32>
    %82 = vector.multi_reduction <maximumf>, %81, %cst_32 [1] : vector<8x8xf32> to vector<8xf32>
    %83 = vector.shape_cast %82 : vector<8xf32> to vector<8x1xf32>
    %84 = vector.broadcast %83 : vector<8x1xf32> to vector<8x8xf32>
    %85 = arith.subf %81, %84 : vector<8x8xf32>
    %86 = math.exp %85 : vector<8x8xf32>
    %cst_33 = arith.constant dense<0.000000e+00> : vector<8xf32>
    %87 = vector.multi_reduction <add>, %86, %cst_33 [1] : vector<8x8xf32> to vector<8xf32>
    %88 = vector.shape_cast %87 : vector<8xf32> to vector<8x1xf32>
    %89 = tpu.reciprocal %88 {approx = true} : vector<8x1xf32> -> vector<8x1xf32>
    %90 = vector.broadcast %89 : vector<8x1xf32> to vector<8x8xf32>
    %91 = arith.mulf %86, %90 : vector<8x8xf32>
    %92 = arith.truncf %91 : vector<8x8xf32> to vector<8x8xbf16>
    %cst_34 = arith.constant dense<0.000000e+00> : vector<8x8xf32>
    %93 = tpu.matmul %92, %75, %cst_34 {dimension_numbers = #tpu.dot_dimension_numbers<[1], [0], [0], [1], [0, 0, 1, 1], [], []>} : vector<8x8xbf16>, vector<8x8xbf16>, vector<8x8xf32> -> vector<8x8xf32>
    %94 = tpu.concatenate %30, %51, %72, %93 in 1 : vector<8x8xf32>, vector<8x8xf32>, vector<8x8xf32>, vector<8x8xf32> -> vector<8x32xf32>
    %95 = arith.truncf %94 : vector<8x32xf32> to vector<8x32xbf16>
    %c0_35 = arith.constant 0 : index
    %c0_36 = arith.constant 0 : index
    %c0_37 = arith.constant 0 : index
    %96 = vector.load %arg5[%c0_35, %c0_36, %c0_37] : memref<1x8x32xbf16, #tpu.memory_space<vmem>>, vector<1x8x32xbf16>
    %97 = vector.shape_cast %96 : vector<1x8x32xbf16> to vector<8x32xbf16>
    %98 = vector.shape_cast %95 : vector<8x32xbf16> to vector<1x8x32xbf16>
    tpu.vector_store %arg5[%c0_35, %c0_36, %c0_37], %98 {strides = array<i32>} : memref<1x8x32xbf16, #tpu.memory_space<vmem>>, vector<1x8x32xbf16>,
    return
  }
  func.func @transform_0(%arg0: i32) -> (i32, i32, i32) {
    %c0_i32 = arith.constant 0 : i32
    %c0_i32_0 = arith.constant 0 : i32
    %c0_i32_1 = arith.constant 0 : i32
    return %arg0, %c0_i32, %c0_i32_0 : i32, i32, i32
  }
  func.func @transform_1(%arg0: i32) -> (i32, i32, i32) {
    %c0_i32 = arith.constant 0 : i32
    %c0_i32_0 = arith.constant 0 : i32
    %c0_i32_1 = arith.constant 0 : i32
    return %arg0, %c0_i32, %c0_i32_0 : i32, i32, i32
  }
  func.func @transform_2(%arg0: i32) -> (i32, i32, i32) {
    %c0_i32 = arith.constant 0 : i32
    %c0_i32_0 = arith.constant 0 : i32
    %c0_i32_1 = arith.constant 0 : i32
    return %arg0, %c0_i32, %c0_i32_0 : i32, i32, i32
  }
  func.func @transform_3(%arg0: i32) -> (i32, i32, i32) {
    %c0_i32 = arith.constant 0 : i32
    %c0_i32_0 = arith.constant 0 : i32
    %c0_i32_1 = arith.constant 0 : i32
    return %arg0, %c0_i32, %c0_i32_0 : i32, i32, i32
  }
  func.func @transform_4(%arg0: i32) -> (i32, i32, i32) {
    %c0_i32 = arith.constant 0 : i32
    %c0_i32_0 = arith.constant 0 : i32
    %c0_i32_1 = arith.constant 0 : i32
    return %arg0, %c0_i32, %c0_i32_0 : i32, i32, i32
  }
}

module attributes {stable_mosaic.version = 11 : i64} {
  func.func @_mm_bias_relu_kernel(%arg0: i32, %arg1: i32, %arg2: i32, %arg3: memref<16x32xbf16, #tpu.memory_space<vmem>>, %arg4: memref<32x128xbf16, #tpu.memory_space<vmem>>, %arg5: memref<1x128xf32, #tpu.memory_space<vmem>>, %arg6: memref<16x128xbf16, #tpu.memory_space<vmem>>, %arg7: memref<16x128xf32, #tpu.memory_space<vmem>>) attributes {dimension_semantics = [#tpu.dimension_semantics<parallel>, #tpu.dimension_semantics<parallel>, #tpu.dimension_semantics<arbitrary>], iteration_bounds = array<i64: 1, 1, 1>, scalar_prefetch = 0 : i64, scratch_operands = 1 : i64, tpu.core_type = #tpu.core_type<tc>, window_params = [{transform_indices = @transform_0, window_bounds = array<i64: 16, 32>}, {transform_indices = @transform_1, window_bounds = array<i64: 32, 128>}, {transform_indices = @transform_2, window_bounds = array<i64: 1, 128>}, {transform_indices = @transform_3, window_bounds = array<i64: 16, 128>}]} {
    %c0_i32 = arith.constant 0 : i32
    %0 = arith.cmpi eq, %arg2, %c0_i32 : i32
    %1 = arith.extui %0 : i1 to i32
    %c0_i32_0 = arith.constant 0 : i32
    %2 = arith.cmpi ne, %1, %c0_i32_0 : i32
    scf.if %2 {
      %cst_10 = arith.constant 0.000000e+00 : f32
      %12 = vector.broadcast %cst_10 : f32 to vector<16x128xf32>
      %c0_11 = arith.constant 0 : index
      %c0_12 = arith.constant 0 : index
      %13 = vector.load %arg7[%c0_11, %c0_12] : memref<16x128xf32, #tpu.memory_space<vmem>>, vector<16x128xf32>
      tpu.vector_store %arg7[%c0_11, %c0_12], %12 {strides = array<i32>} : memref<16x128xf32, #tpu.memory_space<vmem>>, vector<16x128xf32>,
    } else {
    }
    %c0 = arith.constant 0 : index
    %c0_1 = arith.constant 0 : index
    %3 = vector.load %arg7[%c0, %c0_1] : memref<16x128xf32, #tpu.memory_space<vmem>>, vector<16x128xf32>
    %c0_2 = arith.constant 0 : index
    %c0_3 = arith.constant 0 : index
    %4 = vector.load %arg3[%c0_2, %c0_3] : memref<16x32xbf16, #tpu.memory_space<vmem>>, vector<16x32xbf16>
    %c0_4 = arith.constant 0 : index
    %c0_5 = arith.constant 0 : index
    %5 = vector.load %arg4[%c0_4, %c0_5] : memref<32x128xbf16, #tpu.memory_space<vmem>>, vector<32x128xbf16>
    %cst = arith.constant dense<0.000000e+00> : vector<16x128xf32>
    %6 = tpu.matmul %4, %5, %cst {dimension_numbers = #tpu.dot_dimension_numbers<[1], [0], [0], [1], [0, 0, 1, 1], [], []>} : vector<16x32xbf16>, vector<32x128xbf16>, vector<16x128xf32> -> vector<16x128xf32>
    %7 = arith.addf %3, %6 : vector<16x128xf32>
    %c0_6 = arith.constant 0 : index
    %c0_7 = arith.constant 0 : index
    %8 = vector.load %arg7[%c0_6, %c0_7] : memref<16x128xf32, #tpu.memory_space<vmem>>, vector<16x128xf32>
    tpu.vector_store %arg7[%c0_6, %c0_7], %7 {strides = array<i32>} : memref<16x128xf32, #tpu.memory_space<vmem>>, vector<16x128xf32>,
    %c0_i32_8 = arith.constant 0 : i32
    %9 = arith.cmpi eq, %arg2, %c0_i32_8 : i32
    %10 = arith.extui %9 : i1 to i32
    %c0_i32_9 = arith.constant 0 : i32
    %11 = arith.cmpi ne, %10, %c0_i32_9 : i32
    scf.if %11 {
      %c0_10 = arith.constant 0 : index
      %c0_11 = arith.constant 0 : index
      %12 = vector.load %arg7[%c0_10, %c0_11] : memref<16x128xf32, #tpu.memory_space<vmem>>, vector<16x128xf32>
      %c0_12 = arith.constant 0 : index
      %c0_13 = arith.constant 0 : index
      %13 = vector.load %arg5[%c0_12, %c0_13] : memref<1x128xf32, #tpu.memory_space<vmem>>, vector<1x128xf32>
      %14 = vector.broadcast %13 : vector<1x128xf32> to vector<16x128xf32>
      %15 = arith.addf %12, %14 : vector<16x128xf32>
      %cst_14 = arith.constant 0.000000e+00 : f32
      %16 = vector.broadcast %cst_14 : f32 to vector<16x128xf32>
      %17 = arith.maximumf %15, %16 : vector<16x128xf32>
      %18 = arith.truncf %17 : vector<16x128xf32> to vector<16x128xbf16>
      %c0_15 = arith.constant 0 : index
      %c0_16 = arith.constant 0 : index
      %19 = vector.load %arg6[%c0_15, %c0_16] : memref<16x128xbf16, #tpu.memory_space<vmem>>, vector<16x128xbf16>
      tpu.vector_store %arg6[%c0_15, %c0_16], %18 {strides = array<i32>} : memref<16x128xbf16, #tpu.memory_space<vmem>>, vector<16x128xbf16>,
    } else {
    }
    return
  }
  func.func @transform_0(%arg0: i32, %arg1: i32, %arg2: i32) -> (i32, i32) {
    %c0_i32 = arith.constant 0 : i32
    return %arg0, %arg2 : i32, i32
  }
  func.func @transform_1(%arg0: i32, %arg1: i32, %arg2: i32) -> (i32, i32) {
    %c0_i32 = arith.constant 0 : i32
    return %arg2, %arg1 : i32, i32
  }
  func.func @transform_2(%arg0: i32, %arg1: i32, %arg2: i32) -> (i32, i32) {
    %c0_i32 = arith.constant 0 : i32
    %c0_i32_0 = arith.constant 0 : i32
    return %c0_i32, %arg1 : i32, i32
  }
  func.func @transform_3(%arg0: i32, %arg1: i32, %arg2: i32) -> (i32, i32) {
    %c0_i32 = arith.constant 0 : i32
    return %arg0, %arg1 : i32, i32
  }
}

module attributes {stable_mosaic.version = 11 : i64} {
  func.func @kernel(%arg0: i32, %arg1: memref<1x8x32xbf16, #tpu.memory_space<vmem>>, %arg2: memref<1x8x32xbf16, #tpu.memory_space<vmem>>, %arg3: memref<1x8x32xbf16, #tpu.memory_space<vmem>>, %arg4: memref<1x8x32xbf16, #tpu.memory_space<vmem>>) attributes {dimension_semantics = [#tpu.dimension_semantics<parallel>], iteration_bounds = array<i64: 2>, scalar_prefetch = 0 : i64, scratch_operands = 0 : i64, tpu.core_type = #tpu.core_type<tc>, window_params = [{transform_indices = @transform_0, window_bounds = array<i64: 1, 8, 32>}, {transform_indices = @transform_1, window_bounds = array<i64: 1, 8, 32>}, {transform_indices = @transform_2, window_bounds = array<i64: 1, 8, 32>}, {transform_indices = @transform_3, window_bounds = array<i64: 1, 8, 32>}]} {
    %c0 = arith.constant 0 : index
    %c0_0 = arith.constant 0 : index
    %c0_1 = arith.constant 0 : index
    %0 = vector.load %arg1[%c0, %c0_0, %c0_1] : memref<1x8x32xbf16, #tpu.memory_space<vmem>>, vector<1x8x32xbf16>
    %1 = vector.shape_cast %0 : vector<1x8x32xbf16> to vector<8x32xbf16>
    %c0_2 = arith.constant 0 : index
    %c0_3 = arith.constant 0 : index
    %c0_4 = arith.constant 0 : index
    %2 = vector.load %arg2[%c0_2, %c0_3, %c0_4] : memref<1x8x32xbf16, #tpu.memory_space<vmem>>, vector<1x8x32xbf16>
    %3 = vector.shape_cast %2 : vector<1x8x32xbf16> to vector<8x32xbf16>
    %c0_5 = arith.constant 0 : index
    %c0_6 = arith.constant 0 : index
    %c0_7 = arith.constant 0 : index
    %4 = vector.load %arg3[%c0_5, %c0_6, %c0_7] : memref<1x8x32xbf16, #tpu.memory_space<vmem>>, vector<1x8x32xbf16>
    %5 = vector.shape_cast %4 : vector<1x8x32xbf16> to vector<8x32xbf16>
    %6 = vector.extract_strided_slice %1 {offsets = [0, 0], sizes = [8, 8], strides = [1, 1]} : vector<8x32xbf16> to vector<8x8xbf16>
    %7 = vector.extract_strided_slice %3 {offsets = [0, 0], sizes = [8, 8], strides = [1, 1]} : vector<8x32xbf16> to vector<8x8xbf16>
    %8 = vector.extract_strided_slice %5 {offsets = [0, 0], sizes = [8, 8], strides = [1, 1]} : vector<8x32xbf16> to vector<8x8xbf16>
    %9 = tpu.transpose %7, [1, 0] : vector<8x8xbf16> -> vector<8x8xbf16>
    %cst = arith.constant dense<0.000000e+00> : vector<8x8xf32>
    %10 = tpu.matmul %6, %9, %cst {dimension_numbers = #tpu.dot_dimension_numbers<[1], [0], [0], [1], [0, 0, 1, 1], [], []>} : vector<8x8xbf16>, vector<8x8xbf16>, vector<8x8xf32> -> vector<8x8xf32>
    %cst_8 = arith.constant 0.353553385 : f32
    %11 = vector.broadcast %cst_8 : f32 to vector<8x8xf32>
    %12 = arith.mulf %10, %11 : vector<8x8xf32>
    %cst_9 = arith.constant dense<0xFF800000> : vector<8xf32>
    %13 = vector.multi_reduction <maximumf>, %12, %cst_9 [1] : vector<8x8xf32> to vector<8xf32>
    %14 = vector.shape_cast %13 : vector<8xf32> to vector<8x1xf32>
    %15 = vector.broadcast %14 : vector<8x1xf32> to vector<8x8xf32>
    %16 = arith.subf %12, %15 : vector<8x8xf32>
    %17 = math.exp %16 : vector<8x8xf32>
    %cst_10 = arith.constant dense<0.000000e+00> : vector<8xf32>
    %18 = vector.multi_reduction <add>, %17, %cst_10 [1] : vector<8x8xf32> to vector<8xf32>
    %19 = vector.shape_cast %18 : vector<8xf32> to vector<8x1xf32>
    %20 = tpu.reciprocal %19 {approx = true} : vector<8x1xf32> -> vector<8x1xf32>
    %21 = vector.broadcast %20 : vector<8x1xf32> to vector<8x8xf32>
    %22 = arith.mulf %17, %21 : vector<8x8xf32>
    %23 = arith.truncf %22 : vector<8x8xf32> to vector<8x8xbf16>
    %cst_11 = arith.constant dense<0.000000e+00> : vector<8x8xf32>
    %24 = tpu.matmul %23, %8, %cst_11 {dimension_numbers = #tpu.dot_dimension_numbers<[1], [0], [0], [1], [0, 0, 1, 1], [], []>} : vector<8x8xbf16>, vector<8x8xbf16>, vector<8x8xf32> -> vector<8x8xf32>
    %25 = vector.extract_strided_slice %1 {offsets = [0, 8], sizes = [8, 8], strides = [1, 1]} : vector<8x32xbf16> to vector<8x8xbf16>
    %26 = vector.extract_strided_slice %3 {offsets = [0, 8], sizes = [8, 8], strides = [1, 1]} : vector<8x32xbf16> to vector<8x8xbf16>
    %27 = vector.extract_strided_slice %5 {offsets = [0, 8], sizes = [8, 8], strides = [1, 1]} : vector<8x32xbf16> to vector<8x8xbf16>
    %28 = tpu.transpose %26, [1, 0] : vector<8x8xbf16> -> vector<8x8xbf16>
    %cst_12 = arith.constant dense<0.000000e+00> : vector<8x8xf32>
    %29 = tpu.matmul %25, %28, %cst_12 {dimension_numbers = #tpu.dot_dimension_numbers<[1], [0], [0], [1], [0, 0, 1, 1], [], []>} : vector<8x8xbf16>, vector<8x8xbf16>, vector<8x8xf32> -> vector<8x8xf32>
    %cst_13 = arith.constant 0.353553385 : f32
    %30 = vector.broadcast %cst_13 : f32 to vector<8x8xf32>
    %31 = arith.mulf %29, %30 : vector<8x8xf32>
    %cst_14 = arith.constant dense<0xFF800000> : vector<8xf32>
    %32 = vector.multi_reduction <maximumf>, %31, %cst_14 [1] : vector<8x8xf32> to vector<8xf32>
    %33 = vector.shape_cast %32 : vector<8xf32> to vector<8x1xf32>
    %34 = vector.broadcast %33 : vector<8x1xf32> to vector<8x8xf32>
    %35 = arith.subf %31, %34 : vector<8x8xf32>
    %36 = math.exp %35 : vector<8x8xf32>
    %cst_15 = arith.constant dense<0.000000e+00> : vector<8xf32>
    %37 = vector.multi_reduction <add>, %36, %cst_15 [1] : vector<8x8xf32> to vector<8xf32>
    %38 = vector.shape_cast %37 : vector<8xf32> to vector<8x1xf32>
    %39 = tpu.reciprocal %38 {approx = true} : vector<8x1xf32> -> vector<8x1xf32>
    %40 = vector.broadcast %39 : vector<8x1xf32> to vector<8x8xf32>
    %41 = arith.mulf %36, %40 : vector<8x8xf32>
    %42 = arith.truncf %41 : vector<8x8xf32> to vector<8x8xbf16>
    %cst_16 = arith.constant dense<0.000000e+00> : vector<8x8xf32>
    %43 = tpu.matmul %42, %27, %cst_16 {dimension_numbers = #tpu.dot_dimension_numbers<[1], [0], [0], [1], [0, 0, 1, 1], [], []>} : vector<8x8xbf16>, vector<8x8xbf16>, vector<8x8xf32> -> vector<8x8xf32>
    %44 = vector.extract_strided_slice %1 {offsets = [0, 16], sizes = [8, 8], strides = [1, 1]} : vector<8x32xbf16> to vector<8x8xbf16>
    %45 = vector.extract_strided_slice %3 {offsets = [0, 16], sizes = [8, 8], strides = [1, 1]} : vector<8x32xbf16> to vector<8x8xbf16>
    %46 = vector.extract_strided_slice %5 {offsets = [0, 16], sizes = [8, 8], strides = [1, 1]} : vector<8x32xbf16> to vector<8x8xbf16>
    %47 = tpu.transpose %45, [1, 0] : vector<8x8xbf16> -> vector<8x8xbf16>
    %cst_17 = arith.constant dense<0.000000e+00> : vector<8x8xf32>
    %48 = tpu.matmul %44, %47, %cst_17 {dimension_numbers = #tpu.dot_dimension_numbers<[1], [0], [0], [1], [0, 0, 1, 1], [], []>} : vector<8x8xbf16>, vector<8x8xbf16>, vector<8x8xf32> -> vector<8x8xf32>
    %cst_18 = arith.constant 0.353553385 : f32
    %49 = vector.broadcast %cst_18 : f32 to vector<8x8xf32>
    %50 = arith.mulf %48, %49 : vector<8x8xf32>
    %cst_19 = arith.constant dense<0xFF800000> : vector<8xf32>
    %51 = vector.multi_reduction <maximumf>, %50, %cst_19 [1] : vector<8x8xf32> to vector<8xf32>
    %52 = vector.shape_cast %51 : vector<8xf32> to vector<8x1xf32>
    %53 = vector.broadcast %52 : vector<8x1xf32> to vector<8x8xf32>
    %54 = arith.subf %50, %53 : vector<8x8xf32>
    %55 = math.exp %54 : vector<8x8xf32>
    %cst_20 = arith.constant dense<0.000000e+00> : vector<8xf32>
    %56 = vector.multi_reduction <add>, %55, %cst_20 [1] : vector<8x8xf32> to vector<8xf32>
    %57 = vector.shape_cast %56 : vector<8xf32> to vector<8x1xf32>
    %58 = tpu.reciprocal %57 {approx = true} : vector<8x1xf32> -> vector<8x1xf32>
    %59 = vector.broadcast %58 : vector<8x1xf32> to vector<8x8xf32>
    %60 = arith.mulf %55, %59 : vector<8x8xf32>
    %61 = arith.truncf %60 : vector<8x8xf32> to vector<8x8xbf16>
    %cst_21 = arith.constant dense<0.000000e+00> : vector<8x8xf32>
    %62 = tpu.matmul %61, %46, %cst_21 {dimension_numbers = #tpu.dot_dimension_numbers<[1], [0], [0], [1], [0, 0, 1, 1], [], []>} : vector<8x8xbf16>, vector<8x8xbf16>, vector<8x8xf32> -> vector<8x8xf32>
    %63 = vector.extract_strided_slice %1 {offsets = [0, 24], sizes = [8, 8], strides = [1, 1]} : vector<8x32xbf16> to vector<8x8xbf16>
    %64 = vector.extract_strided_slice %3 {offsets = [0, 24], sizes = [8, 8], strides = [1, 1]} : vector<8x32xbf16> to vector<8x8xbf16>
    %65 = vector.extract_strided_slice %5 {offsets = [0, 24], sizes = [8, 8], strides = [1, 1]} : vector<8x32xbf16> to vector<8x8xbf16>
    %66 = tpu.transpose %64, [1, 0] : vector<8x8xbf16> -> vector<8x8xbf16>
    %cst_22 = arith.constant dense<0.000000e+00> : vector<8x8xf32>
    %67 = tpu.matmul %63, %66, %cst_22 {dimension_numbers = #tpu.dot_dimension_numbers<[1], [0], [0], [1], [0, 0, 1, 1], [], []>} : vector<8x8xbf16>, vector<8x8xbf16>, vector<8x8xf32> -> vector<8x8xf32>
    %cst_23 = arith.constant 0.353553385 : f32
    %68 = vector.broadcast %cst_23 : f32 to vector<8x8xf32>
    %69 = arith.mulf %67, %68 : vector<8x8xf32>
    %cst_24 = arith.constant dense<0xFF800000> : vector<8xf32>
    %70 = vector.multi_reduction <maximumf>, %69, %cst_24 [1] : vector<8x8xf32> to vector<8xf32>
    %71 = vector.shape_cast %70 : vector<8xf32> to vector<8x1xf32>
    %72 = vector.broadcast %71 : vector<8x1xf32> to vector<8x8xf32>
    %73 = arith.subf %69, %72 : vector<8x8xf32>
    %74 = math.exp %73 : vector<8x8xf32>
    %cst_25 = arith.constant dense<0.000000e+00> : vector<8xf32>
    %75 = vector.multi_reduction <add>, %74, %cst_25 [1] : vector<8x8xf32> to vector<8xf32>
    %76 = vector.shape_cast %75 : vector<8xf32> to vector<8x1xf32>
    %77 = tpu.reciprocal %76 {approx = true} : vector<8x1xf32> -> vector<8x1xf32>
    %78 = vector.broadcast %77 : vector<8x1xf32> to vector<8x8xf32>
    %79 = arith.mulf %74, %78 : vector<8x8xf32>
    %80 = arith.truncf %79 : vector<8x8xf32> to vector<8x8xbf16>
    %cst_26 = arith.constant dense<0.000000e+00> : vector<8x8xf32>
    %81 = tpu.matmul %80, %65, %cst_26 {dimension_numbers = #tpu.dot_dimension_numbers<[1], [0], [0], [1], [0, 0, 1, 1], [], []>} : vector<8x8xbf16>, vector<8x8xbf16>, vector<8x8xf32> -> vector<8x8xf32>
    %82 = tpu.concatenate %24, %43, %62, %81 in 1 : vector<8x8xf32>, vector<8x8xf32>, vector<8x8xf32>, vector<8x8xf32> -> vector<8x32xf32>
    %83 = arith.truncf %82 : vector<8x32xf32> to vector<8x32xbf16>
    %c0_27 = arith.constant 0 : index
    %c0_28 = arith.constant 0 : index
    %c0_29 = arith.constant 0 : index
    %84 = vector.load %arg4[%c0_27, %c0_28, %c0_29] : memref<1x8x32xbf16, #tpu.memory_space<vmem>>, vector<1x8x32xbf16>
    %85 = vector.shape_cast %84 : vector<1x8x32xbf16> to vector<8x32xbf16>
    %86 = vector.shape_cast %83 : vector<8x32xbf16> to vector<1x8x32xbf16>
    tpu.vector_store %arg4[%c0_27, %c0_28, %c0_29], %86 {strides = array<i32>} : memref<1x8x32xbf16, #tpu.memory_space<vmem>>, vector<1x8x32xbf16>,
    return
  }
  func.func @transform_0(%arg0: i32) -> (i32, i32, i32) {
    %c0_i32 = arith.constant 0 : i32
    %c0_i32_0 = arith.constant 0 : i32
    %c0_i32_1 = arith.constant 0 : i32
    return %arg0, %c0_i32, %c0_i32_0 : i32, i32, i32
  }
  func.func @transform_1(%arg0: i32) -> (i32, i32, i32) {
    %c0_i32 = arith.constant 0 : i32
    %c0_i32_0 = arith.constant 0 : i32
    %c0_i32_1 = arith.constant 0 : i32
    return %arg0, %c0_i32, %c0_i32_0 : i32, i32, i32
  }
  func.func @transform_2(%arg0: i32) -> (i32, i32, i32) {
    %c0_i32 = arith.constant 0 : i32
    %c0_i32_0 = arith.constant 0 : i32
    %c0_i32_1 = arith.constant 0 : i32
    return %arg0, %c0_i32, %c0_i32_0 : i32, i32, i32
  }
  func.func @transform_3(%arg0: i32) -> (i32, i32, i32) {
    %c0_i32 = arith.constant 0 : i32
    %c0_i32_0 = arith.constant 0 : i32
    %c0_i32_1 = arith.constant 0 : i32
    return %arg0, %c0_i32, %c0_i32_0 : i32, i32, i32
  }
}

module attributes {stable_mosaic.version = 11 : i64} {
  func.func @_mm_bias_res_ln_kernel(%arg0: i32, %arg1: i32, %arg2: memref<16x128xbf16, #tpu.memory_space<vmem>>, %arg3: memref<128x32xbf16, #tpu.memory_space<vmem>>, %arg4: memref<1x32xf32, #tpu.memory_space<vmem>>, %arg5: memref<16x32xbf16, #tpu.memory_space<vmem>>, %arg6: memref<1x32xf32, #tpu.memory_space<vmem>>, %arg7: memref<1x32xf32, #tpu.memory_space<vmem>>, %arg8: memref<16x32xbf16, #tpu.memory_space<vmem>>, %arg9: memref<16x32xf32, #tpu.memory_space<vmem>>) attributes {dimension_semantics = [#tpu.dimension_semantics<parallel>, #tpu.dimension_semantics<arbitrary>], iteration_bounds = array<i64: 1, 1>, scalar_prefetch = 0 : i64, scratch_operands = 1 : i64, tpu.core_type = #tpu.core_type<tc>, window_params = [{transform_indices = @transform_0, window_bounds = array<i64: 16, 128>}, {transform_indices = @transform_1, window_bounds = array<i64: 128, 32>}, {pipeline_mode = #tpu.pipeline_mode<synchronous>, transform_indices = @transform_2, window_bounds = array<i64: 1, 32>}, {transform_indices = @transform_3, window_bounds = array<i64: 16, 32>}, {pipeline_mode = #tpu.pipeline_mode<synchronous>, transform_indices = @transform_4, window_bounds = array<i64: 1, 32>}, {pipeline_mode = #tpu.pipeline_mode<synchronous>, transform_indices = @transform_5, window_bounds = array<i64: 1, 32>}, {transform_indices = @transform_6, window_bounds = array<i64: 16, 32>}]} {
    %c0_i32 = arith.constant 0 : i32
    %0 = arith.cmpi eq, %arg1, %c0_i32 : i32
    %1 = arith.extui %0 : i1 to i32
    %c0_i32_0 = arith.constant 0 : i32
    %2 = arith.cmpi ne, %1, %c0_i32_0 : i32
    scf.if %2 {
      %cst_10 = arith.constant 0.000000e+00 : f32
      %12 = vector.broadcast %cst_10 : f32 to vector<16x32xf32>
      %c0_11 = arith.constant 0 : index
      %c0_12 = arith.constant 0 : index
      %13 = vector.load %arg9[%c0_11, %c0_12] : memref<16x32xf32, #tpu.memory_space<vmem>>, vector<16x32xf32>
      tpu.vector_store %arg9[%c0_11, %c0_12], %12 {strides = array<i32>} : memref<16x32xf32, #tpu.memory_space<vmem>>, vector<16x32xf32>,
    } else {
    }
    %c0 = arith.constant 0 : index
    %c0_1 = arith.constant 0 : index
    %3 = vector.load %arg9[%c0, %c0_1] : memref<16x32xf32, #tpu.memory_space<vmem>>, vector<16x32xf32>
    %c0_2 = arith.constant 0 : index
    %c0_3 = arith.constant 0 : index
    %4 = vector.load %arg2[%c0_2, %c0_3] : memref<16x128xbf16, #tpu.memory_space<vmem>>, vector<16x128xbf16>
    %c0_4 = arith.constant 0 : index
    %c0_5 = arith.constant 0 : index
    %5 = vector.load %arg3[%c0_4, %c0_5] : memref<128x32xbf16, #tpu.memory_space<vmem>>, vector<128x32xbf16>
    %cst = arith.constant dense<0.000000e+00> : vector<16x32xf32>
    %6 = tpu.matmul %4, %5, %cst {dimension_numbers = #tpu.dot_dimension_numbers<[1], [0], [0], [1], [0, 0, 1, 1], [], []>} : vector<16x128xbf16>, vector<128x32xbf16>, vector<16x32xf32> -> vector<16x32xf32>
    %7 = arith.addf %3, %6 : vector<16x32xf32>
    %c0_6 = arith.constant 0 : index
    %c0_7 = arith.constant 0 : index
    %8 = vector.load %arg9[%c0_6, %c0_7] : memref<16x32xf32, #tpu.memory_space<vmem>>, vector<16x32xf32>
    tpu.vector_store %arg9[%c0_6, %c0_7], %7 {strides = array<i32>} : memref<16x32xf32, #tpu.memory_space<vmem>>, vector<16x32xf32>,
    %c0_i32_8 = arith.constant 0 : i32
    %9 = arith.cmpi eq, %arg1, %c0_i32_8 : i32
    %10 = arith.extui %9 : i1 to i32
    %c0_i32_9 = arith.constant 0 : i32
    %11 = arith.cmpi ne, %10, %c0_i32_9 : i32
    scf.if %11 {
      %c0_10 = arith.constant 0 : index
      %c0_11 = arith.constant 0 : index
      %12 = vector.load %arg9[%c0_10, %c0_11] : memref<16x32xf32, #tpu.memory_space<vmem>>, vector<16x32xf32>
      %c0_12 = arith.constant 0 : index
      %c0_13 = arith.constant 0 : index
      %13 = vector.load %arg4[%c0_12, %c0_13] : memref<1x32xf32, #tpu.memory_space<vmem>>, vector<1x32xf32>
      %14 = vector.broadcast %13 : vector<1x32xf32> to vector<16x32xf32>
      %15 = arith.addf %12, %14 : vector<16x32xf32>
      %c0_14 = arith.constant 0 : index
      %c0_15 = arith.constant 0 : index
      %16 = vector.load %arg5[%c0_14, %c0_15] : memref<16x32xbf16, #tpu.memory_space<vmem>>, vector<16x32xbf16>
      %17 = arith.extf %16 : vector<16x32xbf16> to vector<16x32xf32>
      %18 = arith.addf %15, %17 : vector<16x32xf32>
      %cst_16 = arith.constant dense<0.000000e+00> : vector<16xf32>
      %19 = vector.multi_reduction <add>, %18, %cst_16 [1] : vector<16x32xf32> to vector<16xf32>
      %20 = vector.shape_cast %19 : vector<16xf32> to vector<16x1xf32>
      %cst_17 = arith.constant 3.200000e+01 : f32
      %21 = vector.broadcast %cst_17 : f32 to vector<16x1xf32>
      %22 = arith.divf %20, %21 : vector<16x1xf32>
      %23 = vector.broadcast %22 : vector<16x1xf32> to vector<16x32xf32>
      %24 = arith.subf %18, %23 : vector<16x32xf32>
      %25 = vector.broadcast %22 : vector<16x1xf32> to vector<16x32xf32>
      %26 = arith.subf %18, %25 : vector<16x32xf32>
      %27 = arith.mulf %24, %26 : vector<16x32xf32>
      %cst_18 = arith.constant dense<0.000000e+00> : vector<16xf32>
      %28 = vector.multi_reduction <add>, %27, %cst_18 [1] : vector<16x32xf32> to vector<16xf32>
      %29 = vector.shape_cast %28 : vector<16xf32> to vector<16x1xf32>
      %cst_19 = arith.constant 3.200000e+01 : f32
      %30 = vector.broadcast %cst_19 : f32 to vector<16x1xf32>
      %31 = arith.divf %29, %30 : vector<16x1xf32>
      %32 = vector.broadcast %22 : vector<16x1xf32> to vector<16x32xf32>
      %33 = arith.subf %18, %32 : vector<16x32xf32>
      %cst_20 = arith.constant 9.99999974E-6 : f32
      %34 = vector.broadcast %cst_20 : f32 to vector<16x1xf32>
      %35 = arith.addf %31, %34 : vector<16x1xf32>
      %36 = math.rsqrt %35 : vector<16x1xf32>
      %37 = vector.broadcast %36 : vector<16x1xf32> to vector<16x32xf32>
      %38 = arith.mulf %33, %37 : vector<16x32xf32>
      %c0_21 = arith.constant 0 : index
      %c0_22 = arith.constant 0 : index
      %39 = vector.load %arg6[%c0_21, %c0_22] : memref<1x32xf32, #tpu.memory_space<vmem>>, vector<1x32xf32>
      %40 = vector.broadcast %39 : vector<1x32xf32> to vector<16x32xf32>
      %41 = arith.mulf %38, %40 : vector<16x32xf32>
      %c0_23 = arith.constant 0 : index
      %c0_24 = arith.constant 0 : index
      %42 = vector.load %arg7[%c0_23, %c0_24] : memref<1x32xf32, #tpu.memory_space<vmem>>, vector<1x32xf32>
      %43 = vector.broadcast %42 : vector<1x32xf32> to vector<16x32xf32>
      %44 = arith.addf %41, %43 : vector<16x32xf32>
      %45 = arith.truncf %44 : vector<16x32xf32> to vector<16x32xbf16>
      %c0_25 = arith.constant 0 : index
      %c0_26 = arith.constant 0 : index
      %46 = vector.load %arg8[%c0_25, %c0_26] : memref<16x32xbf16, #tpu.memory_space<vmem>>, vector<16x32xbf16>
      tpu.vector_store %arg8[%c0_25, %c0_26], %45 {strides = array<i32>} : memref<16x32xbf16, #tpu.memory_space<vmem>>, vector<16x32xbf16>,
    } else {
    }
    return
  }
  func.func @transform_0(%arg0: i32, %arg1: i32) -> (i32, i32) {
    %c0_i32 = arith.constant 0 : i32
    return %arg0, %arg1 : i32, i32
  }
  func.func @transform_1(%arg0: i32, %arg1: i32) -> (i32, i32) {
    %c0_i32 = arith.constant 0 : i32
    %c0_i32_0 = arith.constant 0 : i32
    return %arg1, %c0_i32 : i32, i32
  }
  func.func @transform_2(%arg0: i32, %arg1: i32) -> (i32, i32) {
    %c0_i32 = arith.constant 0 : i32
    %c0_i32_0 = arith.constant 0 : i32
    %c0_i32_1 = arith.constant 0 : i32
    return %c0_i32, %c0_i32_0 : i32, i32
  }
  func.func @transform_3(%arg0: i32, %arg1: i32) -> (i32, i32) {
    %c0_i32 = arith.constant 0 : i32
    %c0_i32_0 = arith.constant 0 : i32
    return %arg0, %c0_i32 : i32, i32
  }
  func.func @transform_4(%arg0: i32, %arg1: i32) -> (i32, i32) {
    %c0_i32 = arith.constant 0 : i32
    %c0_i32_0 = arith.constant 0 : i32
    %c0_i32_1 = arith.constant 0 : i32
    return %c0_i32, %c0_i32_0 : i32, i32
  }
  func.func @transform_5(%arg0: i32, %arg1: i32) -> (i32, i32) {
    %c0_i32 = arith.constant 0 : i32
    %c0_i32_0 = arith.constant 0 : i32
    %c0_i32_1 = arith.constant 0 : i32
    return %c0_i32, %c0_i32_0 : i32, i32
  }
  func.func @transform_6(%arg0: i32, %arg1: i32) -> (i32, i32) {
    %c0_i32 = arith.constant 0 : i32
    %c0_i32_0 = arith.constant 0 : i32
    return %arg0, %c0_i32 : i32, i32
  }
}

</mosaic_0001>

<bundles_post_ra>
// kernel: decoder_forward.23
= control target key start
LH: loop header
LB: loop body
LE: loop exit
PB: predicated region body
PF: predicated region fallthrough
CT: control target
= control target key end

     0   :  { %vm16_vm0 = vcmask 261120   ;;  %v137_v0 = vmov 0.0   ;;  %vm138_vm1 = vmmov 0   ;;  %vm106_vm2 = vcmask 257024   ;;  %s174_s1 = inlined_call_operand.vmem [shape: bf16[32,32], index: 1, kind: input, shape index: {}]   ;;  %s175_s0 = inlined_call_operand.vmem [shape: bf16[16,32], index: 0, kind: input, shape index: {}]   ;;  %s176_s2 = inlined_call_operand.vmem [shape: bf16[16,32], index: 2, kind: output, shape index: {}]  }
   0x1   :  { %124 = vmatprep.subr.bf16.mxu0 %v137_v0  ;;  %v134_v1 = vld [vmem:[%s174_s1] sm:$0xff]   ;;  %128 = vmatprep.mubr.msk.bf16.mxu0 %vm138_vm1, %v137_v0  ;;  %17 = vst.msk [vmem:[#allocation2] sm:$0xff] %vm16_vm0, %v137_v0  ;;  %18 = vst.msk [vmem:[#allocation2 + $0x8] sm:$0xff] %vm16_vm0, %v137_v0  ;;  %v135_v2 = vld [vmem:[%s174_s1 + $0x8] sm:$0xff]  }
   0x2   :  { %125 = vmatpush3.bf16.msra.mxu0 %v134_v1  ;;  %v136_v3 = vld [vmem:[%s175_s0] sm:$0xff]  }
   0x3   :  { %126 = vmatprep.subr.bf16.mxu0 %v137_v0 }
   0x6   :  { %127 = vmatpush3.bf16.msra.mxu0 %v135_v2 }
   0x8   :  { %v19_v4 = vld [vmem:[#allocation2] sm:$0xff]  ;;  %v20_v6 = vld [vmem:[#allocation2 + $0x8] sm:$0xff] }
   0x9   :  { %129 = vmatmul.mubr.msk.bf16.vlgmr.msra.gmra.mrb[0].mxu0 %vm16_vm0, %v136_v3 }
  0xdc   :  { %v82_v5 = vpop.f32.mrb[0].mxu0 }
  0xdd   :  { %v89_v7 = vadd.f32 %v82_v5, %v19_v4  ;;  %v130_v8 = vpop.f32.mrb[1].mxu0 }
  0xde   :  { %v85_v9 = vpop.f32.mrb[2].mxu0 }
  0xdf   :  { %91 = vst.msk [vmem:[#allocation2] sm:$0xff] %vm16_vm0, %v89_v7  ;;  %v90_v10 = vadd.f32 %v85_v9, %v20_v6  ;;  %v131_v11 = vpop.f32.mrb[3].mxu0 }
  0xe1   :  { %92 = vst.msk [vmem:[#allocation2 + $0x8] sm:$0xff] %vm16_vm0, %v90_v10 }
  0xe6   :  { %v96_v12 = vld [vmem:[#allocation2] sm:$0xff] }
  0xe7   :  { %v119_v13 = vpack.c.bf16 %v96_v12, %v96_v12 }
  0xe8   :  { %v97_v14 = vld [vmem:[#allocation2 + $0x8] sm:$0xff] }
  0xe9   :  { %107 = vst.msk [vmem:[%s176_s2] sm:$0xf] %vm106_vm2, %v119_v13  ;;  %v120_v15 = vpack.c.bf16 %v97_v14, %v97_v14 }
  0xeb   :  { %108 = vst.msk [vmem:[%s176_s2 + $0x4] sm:$0xf] %vm106_vm2, %v120_v15 }

// kernel: decoder_forward.20
= control target key start
LH: loop header
LB: loop body
LE: loop exit
PB: predicated region body
PF: predicated region fallthrough
CT: control target
= control target key end

     0   :  { %vm16_vm0 = vcmask 785408   ;;  %v138_v0 = vmov 0.0   ;;  %vm139_vm1 = vmmov 0   ;;  %vm44_vm2 = vcmask 261120   ;;  %s174_s1 = inlined_call_operand.vmem [shape: bf16[32,96], index: 1, kind: input, shape index: {}]   ;;  %s175_s0 = inlined_call_operand.vmem [shape: bf16[16,32], index: 0, kind: input, shape index: {}]   ;;  %s176_s2 = inlined_call_operand.vmem [shape: bf16[16,96], index: 2, kind: output, shape index: {}]  }
   0x1   :  { %125 = vmatprep.subr.bf16.mxu0 %v138_v0  ;;  %v135_v1 = vld [vmem:[%s174_s1] sm:$0xff]   ;;  %129 = vmatprep.mubr.msk.bf16.mxu0 %vm139_vm1, %v138_v0  ;;  %17 = vst.msk [vmem:[#allocation2] sm:$0xff] %vm16_vm0, %v138_v0  ;;  %18 = vst.msk [vmem:[#allocation2 + $0x8] sm:$0xff] %vm16_vm0, %v138_v0  ;;  %v136_v2 = vld [vmem:[%s174_s1 + $0x8] sm:$0xff]   ;;  %vm107_vm3 = vcmask 781312  }
   0x2   :  { %126 = vmatpush3.bf16.msra.mxu0 %v135_v1  ;;  %v137_v3 = vld [vmem:[%s175_s0] sm:$0xff]  }
   0x3   :  { %127 = vmatprep.subr.bf16.mxu0 %v138_v0 }
   0x6   :  { %128 = vmatpush3.bf16.msra.mxu0 %v136_v2 }
   0x8   :  { %v19_v4 = vld [vmem:[#allocation2] sm:$0xff]  ;;  %v20_v6 = vld [vmem:[#allocation2 + $0x8] sm:$0xff] }
   0x9   :  { %130 = vmatmul.mubr.msk.bf16.vlgmr.msra.gmra.mrb[0].mxu0 %vm44_vm2, %v137_v3 }
  0xdc   :  { %v82_v5 = vpop.f32.mrb[0].mxu0 }
  0xdd   :  { %v89_v7 = vadd.f32 %v82_v5, %v19_v4  ;;  %v131_v8 = vpop.f32.mrb[1].mxu0 }
  0xde   :  { %v85_v9 = vpop.f32.mrb[2].mxu0 }
  0xdf   :  { %92 = vst.msk [vmem:[#allocation2] sm:$0xff] %vm16_vm0, %v89_v7  ;;  %v90_v10 = vadd.f32 %v85_v9, %v20_v6  ;;  %v132_v11 = vpop.f32.mrb[3].mxu0 }
  0xe1   :  { %93 = vst.msk [vmem:[#allocation2 + $0x8] sm:$0xff] %vm16_vm0, %v90_v10 }
  0xe6   :  { %v97_v12 = vld [vmem:[#allocation2] sm:$0xff] }
  0xe7   :  { %v120_v13 = vpack.c.bf16 %v97_v12, %v97_v12 }
  0xe8   :  { %v98_v14 = vld [vmem:[#allocation2 + $0x8] sm:$0xff] }
  0xe9   :  { %108 = vst.msk [vmem:[%s176_s2] sm:$0xf] %vm107_vm3, %v120_v13  ;;  %v121_v15 = vpack.c.bf16 %v98_v14, %v98_v14 }
  0xeb   :  { %109 = vst.msk [vmem:[%s176_s2 + $0x4] sm:$0xf] %vm107_vm3, %v121_v15 }

// kernel: decoder_forward.22
= control target key start
LH: loop header
LB: loop body
LE: loop exit
PB: predicated region body
PF: predicated region fallthrough
CT: control target
= control target key end

     0   :  { %vm28_vm0 = vcmask 261120   ;;  %v220_v0 = vmov 0.0   ;;  %vm221_vm1 = vmmov 0   ;;  %vm178_vm2 = vcmask 257024   ;;  %s293_s1 = inlined_call_operand.vmem [shape: bf16[32,32], index: 1, kind: input, shape index: {}]   ;;  %s294_s0 = inlined_call_operand.vmem [shape: bf16[16,32], index: 0, kind: input, shape index: {}]   ;;  %s295_s3 = inlined_call_operand.vmem [shape: bf16[16,32], index: 3, kind: input, shape index: {}]   ;;  %s296_s2 = inlined_call_operand.vmem [shape: f32[1,32], index: 2, kind: input, shape index: {}]   ;;  %s297_s4 = inlined_call_operand.vmem [shape: f32[1,32], index: 4, kind: input, shape index: {}]   ;;  %s298_s5 = inlined_call_operand.vmem [shape: f32[1,32], index: 5, kind: input, shape index: {}]   ;;  %s299_s6 = inlined_call_operand.vmem [shape: bf16[16,32], index: 6, kind: output, shape index: {}]  }
   0x1   :  { %203 = vmatprep.subr.bf16.mxu0 %v220_v0  ;;  %v213_v1 = vld [vmem:[%s293_s1] sm:$0xff]   ;;  %207 = vmatprep.mubr.msk.bf16.mxu0 %vm221_vm1, %v220_v0  ;;  %29 = vst.msk [vmem:[#allocation2] sm:$0xff] %vm28_vm0, %v220_v0  ;;  %30 = vst.msk [vmem:[#allocation2 + $0x8] sm:$0xff] %vm28_vm0, %v220_v0  ;;  %v214_v2 = vld [vmem:[%s293_s1 + $0x8] sm:$0xff]  }
   0x2   :  { %204 = vmatpush3.bf16.msra.mxu0 %v213_v1  ;;  %v215_v3 = vld [vmem:[%s294_s0] sm:$0xff]  }
   0x3   :  { %205 = vmatprep.subr.bf16.mxu0 %v220_v0  ;;  %v197_v12 = vld [vmem:[%s295_s3] sm:$0xff]  }
   0x4   :  { %v189_v13 = vld [vmem:[%s296_s2] ss:$0 sm:$0xff]  ;;  %v198_v14 = vunpack.c.l.bf16 %v197_v12  ;;  %v199_v17 = vunpack.c.h.bf16 %v197_v12 }
   0x5   :  { %v190_v41 = vld [vmem:[%s297_s4] ss:$0 sm:$0xff] }
   0x6   :  { %206 = vmatpush3.bf16.msra.mxu0 %v214_v2  ;;  %v191_v43 = vld [vmem:[%s298_s5] ss:$0 sm:$0xff] }
   0x8   :  { %v31_v4 = vld [vmem:[#allocation2] sm:$0xff]  ;;  %v32_v6 = vld [vmem:[#allocation2 + $0x8] sm:$0xff] }
   0x9   :  { %208 = vmatmul.mubr.msk.bf16.vlgmr.msra.gmra.mrb[0].mxu0 %vm28_vm0, %v215_v3 }
  0xdc   :  { %v94_v5 = vpop.f32.mrb[0].mxu0 }
  0xdd   :  { %v101_v7 = vadd.f32 %v94_v5, %v31_v4  ;;  %v209_v8 = vpop.f32.mrb[1].mxu0 }
  0xde   :  { %v97_v9 = vpop.f32.mrb[2].mxu0 }
  0xdf   :  { %103 = vst.msk [vmem:[#allocation2] sm:$0xff] %vm28_vm0, %v101_v7  ;;  %v102_v10 = vadd.f32 %v97_v9, %v32_v6  ;;  %v210_v11 = vpop.f32.mrb[3].mxu0 }
  0xe1   :  { %104 = vst.msk [vmem:[#allocation2 + $0x8] sm:$0xff] %vm28_vm0, %v102_v10 }
  0xe6   :  { %v108_v15 = vld [vmem:[#allocation2] sm:$0xff] }
  0xe7   :  { %v117_v16 = vadd.f32 %v189_v13, %v108_v15 }
  0xe8   :  { %v109_v18 = vld [vmem:[#allocation2 + $0x8] sm:$0xff] }
  0xe9   :  { %v123_v19 = vadd.f32 %v198_v14, %v117_v16  ;;  %v118_v20 = vadd.f32 %v189_v13, %v109_v18 }
  0xeb   :  { %v125_v21 = vsel %vm28_vm0, %v123_v19, 0.0  ;;  %v124_v22 = vadd.f32 %v199_v17, %v118_v20 }
  0xec   :  { %126 = vadd.xlane.f32.xlu0 %v125_v21 }
  0xed   :  { %v128_v23 = vsel %vm28_vm0, %v124_v22, 0.0 }
  0xf0   :  { %129 = vadd.xlane.f32.xlu0 %v128_v23 }
 0x179   :  { %v127_v24 = vpop.xlane.xlu0 %126 }
 0x17a   :  { %v132_v25 = vmul.f32 0.03125, %v127_v24 }
 0x17c   :  { %v134_v26 = vsub.f32 %v123_v19, %v132_v25 }
 0x17d   :  { %v130_v27 = vpop.xlane.xlu0 %129 }
 0x17e   :  { %v133_v28 = vmul.f32 0.03125, %v130_v27  ;;  %v136_v29 = vmul.f32 %v134_v26, %v134_v26 }
 0x180   :  { %v135_v30 = vsub.f32 %v124_v22, %v133_v28  ;;  %v138_v31 = vsel %vm28_vm0, %v136_v29, 0.0 }
 0x181   :  { %139 = vadd.xlane.f32.xlu1 %v138_v31 }
 0x182   :  { %v137_v32 = vmul.f32 %v135_v30, %v135_v30 }
 0x184   :  { %v141_v33 = vsel %vm28_vm0, %v137_v32, 0.0 }
 0x185   :  { %142 = vadd.xlane.f32.xlu1 %v141_v33 }
 0x20e   :  { %v140_v34 = vpop.xlane.xlu1 %139 }
 0x20f   :  { %v144_v35 = vmul.f32 0.03125, %v140_v34 }
 0x211   :  { %v146_v36 = vadd.f32 1e-05, %v144_v35 }
 0x212   :  { %v143_v37 = vpop.xlane.xlu1 %142 }
 0x213   :  { %216 = vrsqrt.f32 %v146_v36  ;;  %v145_v38 = vmul.f32 0.03125, %v143_v37 }
 0x215   :  { %v147_v39 = vadd.f32 1e-05, %v145_v38 }
 0x217   :  { %218 = vrsqrt.f32 %v147_v39 }
 0x21d   :  { %v217_v40 = vpop.eup %216 }
 0x21e   :  { %v150_v42 = vmul.f32 %v217_v40, %v134_v26 }
 0x220   :  { %v159_v44 = vmul.f32 %v190_v41, %v150_v42 }
 0x221   :  { %v219_v45 = vpop.eup %218 }
 0x222   :  { %v168_v46 = vadd.f32 %v191_v43, %v159_v44  ;;  %v151_v47 = vmul.f32 %v219_v45, %v135_v30 }
 0x224   :  { %v194_v48 = vpack.c.bf16 %v168_v46, %v168_v46  ;;  %v160_v49 = vmul.f32 %v190_v41, %v151_v47 }
 0x226   :  { %179 = vst.msk [vmem:[%s299_s6] sm:$0xf] %vm178_vm2, %v194_v48  ;;  %v169_v50 = vadd.f32 %v191_v43, %v160_v49 }
 0x228   :  { %v195_v51 = vpack.c.bf16 %v169_v50, %v169_v50 }
 0x22a   :  { %180 = vst.msk [vmem:[%s299_s6 + $0x4] sm:$0xf] %vm178_vm2, %v195_v51 }

// kernel: decoder_forward.21
= control target key start
LH: loop header
LB: loop body
LE: loop exit
PB: predicated region body
PF: predicated region fallthrough
CT: control target
= control target key end

     0   :  { %s975_s15 = smov 0   ;;  %s1084_s0 = inlined_call_operand.vmem [shape: bf16[2,8,32], index: 0, kind: input, shape index: {}]   ;;  %s1085_s1 = inlined_call_operand.vmem [shape: bf16[2,8,32], index: 1, kind: input, shape index: {}]   ;;  %s1086_s2 = inlined_call_operand.vmem [shape: bf16[2,8,32], index: 2, kind: input, shape index: {}]   ;;  %s1087_s3 = inlined_call_operand.vmem [shape: f32[2,8,8], index: 3, kind: input, shape index: {}]   ;;  %s1088_s4 = inlined_call_operand.vmem [shape: bf16[2,8,32], index: 4, kind: output, shape index: {}]  }
   0x1 LB: > { %s812_s16 = sadd.s32 4294967295, %s940_s15   ;;  %p816_p0 = scmp.ge.s32.totalorder %s940_s15, 1  ;;  %s940_s15 = sphi %s975_s15, %s14_s15  }
   0x2   : > { %p188_p1 = scmp.lt.s32.totalorder %s940_s15, 3 }
   0x4   : > { %p189_p2 = pnand %p816_p0, %p188_p1 }
   0x5   : > { %p224_p3 = scmp.lt.s32.totalorder (!%p189_p2), %s812_s16, 1  ;;  %v942_v0 = vmov (!%p189_p2), 0.0   ;;  %vm943_vm0 = vmmov (!%p189_p2), 0   ;;  %vm250_vm1 = vcmask (!%p189_p2), 64512   ;;  %s944_s28 = smov (!%p189_p2), 120   ;;  %vm314_vm3 = vcmask (!%p189_p2), 1043456  }
   0x6   : > { %192 = sbr.rel (%p189_p2) target bundleno = 1479 (0x5c7), region = 36  ;;  %851 = vmatprep.subr.bf16.mxu0 (!%p189_p2), %v942_v0  ;;  %853 = vmatprep.mubr.msk.bf16.mxu0 (!%p189_p2), %vm943_vm0, %v942_v0  ;;  %s945_s29 = smov (!%p189_p2), 112   ;;  %vm716_vm4 = vcmask (!%p189_p2), 130048   ;;  %vm718_vm5 = vcmask (!%p189_p2), 195584   ;;  %vm721_vm6 = vcmask (!%p189_p2), 257024  }
   0x7   : > { %857 = vmatprep.subr.bf16.mxu1 (!%p189_p2), %v942_v0  ;;  %859 = vmatprep.mubr.msk.bf16.mxu1 (!%p189_p2), %vm943_vm0, %v942_v0  ;;  %s946_s30 = smov (!%p189_p2), 104   ;;  %s947_s8 = smov (!%p189_p2), 8  }
   0x8   : > { %s948_s9 = smov (!%p189_p2), 16   ;;  %s949_s10 = smov (!%p189_p2), 24  }
   0xd   : > { %s1090_s16 = smov (!%p224_p3, %s812_s16), 1 }
   0xe   : > { %s989_s17 = sshll.u32 %s1090_s16, 2  ;;  %s820_s24 = sshll.u32 %s1090_s16, 3 }
   0xf   : > { %s231_s20 = scalar_lea.vmem %s1085_s1, %s989_s17  ;;  %s227_s23 = scalar_lea.vmem %s1084_s0, %s989_s17 }
  0x10   : > { %v246_v1 = vld [vmem:[%s231_s20] sm:$0xf]  ;;  %s239_s27 = scalar_lea.vmem %s1087_s3, %s820_s24  ;;  %s235_s7 = scalar_lea.vmem %s1086_s2, %s989_s17 }
  0x11   : > { %v255_v2 = vsel %vm250_vm1, %v246_v1, 0  ;;  %v245_v3 = vld [vmem:[%s227_s23] sm:$0xf]  ;;  %v825_v12 = vcombine.low %v246_v1, %v246_v1  ;;  %s243_s13 = scalar_lea.vmem %s1088_s4, %s989_s17 }
  0x12   : > { %852 = vmatpush3.bf16.xpose.msra.mxu0 %v255_v2  ;;  %v1007_v4 = vld [vmem:[%s239_s27] sm:$0xff]  ;;  %v824_v13 = vcombine.low %v245_v3, %v245_v3 }
  0x13   : > { %869 = vmatprep.subr.bf16.mxu0 %v942_v0  ;;  %vm249_vm2 = vcmp.eq.f32.partialorder %v1007_v4, 0.0  ;;  %366 = vrot.lane.b32.xlu1 %v825_v12, %s944_s28  ;;  %v1023_v19 = vld [vmem:[%s235_s7] sm:$0xf] }
  0x14   : > { %v316_v20 = vsel %vm314_vm3, %v1023_v19, 0 }
  0x15   : > { %858 = vmatpush3.bf16.msra.mxu1 %v316_v20 }
  0x16   : > { %863 = vmatprep.subr.bf16.mxu1 %v942_v0 }
  0x17   : > { %361 = vrot.lane.b32.xlu1 %v824_v13, %s944_s28 }
  0x19   : > { %854 = vmatmul.mubr.msk.bf16.vlgmr.msra.gmra.mrb[0].mxu0 %vm250_vm1, %v245_v3 }
  0x1a   : > { %871 = vmatprep.mubr.msk.bf16.mxu0 %vm943_vm0, %v942_v0 }
  0x1b   : > { %479 = vrot.lane.b32.xlu1 %v824_v13, %s945_s29 }
  0x1f   : > { %593 = vrot.lane.b32.xlu1 %v825_v12, %s946_s30 }
  0x23   : > { %591 = vrot.lane.b32.xlu1 %v824_v13, %s946_s30 }
  0x85   : > { %v367_v23 = vpop.permute.xlu1 %366 }
  0x86   : > { %v372_v25 = vsel %vm250_vm1, %v367_v23, 0 }
  0x89   : > { %v362_v27 = vpop.permute.xlu1 %361 }
  0x8d   : > { %v480_v29 = vpop.permute.xlu1 %479 }
  0x91   : > { %v594_v31 = vpop.permute.xlu1 %593 }
  0x92   : > { %v599_v32 = vsel %vm250_vm1, %v594_v31, 0 }
  0x95   : > { %v592_v33 = vpop.permute.xlu1 %591 }
  0xec   : > { %v291_v5 = vpop.f32.mrb[0].mxu0 }
  0xed   : > { %v297_v6 = vsel %vm249_vm2, -1e+20, %v291_v5  ;;  %v855_v7 = vpop.f32.mrb[1].mxu0 }
  0xee   : > { %v298_v8 = vmul.f32 0.35355338, %v297_v6  ;;  %v294_v9 = vpop.f32.mrb[2].mxu0  ;;  %v827_v6 = vcombine.low %v1023_v19, %v1023_v19 }
  0xef   : > { %v856_v10 = vpop.f32.mrb[3].mxu0 }
  0xf0   : > { %v299_v11 = vsel %vm250_vm1, %v298_v8, -inf }
  0xf1   : > { %300 = vmax.xlane.f32.xlu0 %v299_v11 }
 0x17e   : > { %v301_v14 = vpop.xlane.xlu0 %300 }
 0x17f   : > { %v302_v15 = vsub.f32 %v298_v8, %v301_v14 }
 0x181   : > { %v303_v16 = vmul.f32 1.442695, %v302_v15 }
 0x183   : > { %918 = vpow2.f32 %v303_v16 }
 0x18d   : > { %v919_v17 = vpop.eup %918 }
 0x18e   : > { %v305_v18 = vsel %vm250_vm1, %v919_v17, 0.0 }
 0x18f   : > { %306 = vadd.xlane.f32.xlu0 %v305_v18 }
 0x1a5   : > { %481 = vrot.lane.b32.xlu0 %v825_v12, %s945_s29 }
 0x21c   : > { %v307_v21 = vpop.xlane.xlu0 %306 }
 0x21d   : > { %920 = vrcp.f32 %v307_v21 }
 0x220   : > { %v482_v28 = vpop.permute.xlu0 %481 }
 0x221   : > { %v487_v30 = vsel %vm250_vm1, %v482_v28, 0 }
 0x227   : > { %v921_v22 = vpop.eup %920 }
 0x228   : > { %v309_v24 = vmul.f32 %v921_v22, %v919_v17 }
 0x22a   : > { %v310_v26 = vpack.c.bf16 %v309_v24, %v309_v24 }
 0x22c   : > { %860 = vmatmul.mubr.msk.bf16.vlgmr.msra.gmra.mrb[0].mxu1 %vm250_vm1, %v310_v26 }
 0x22d   : > { %864 = vmatpush3.bf16.xpose.msra.mxu1 %v372_v25  ;;  %865 = vmatprep.mubr.msk.bf16.mxu1 %vm943_vm0, %v942_v0 }
 0x22e   : > { %875 = vmatprep.subr.bf16.mxu1 %v942_v0 }
 0x234   : > { %866 = vmatmul.mubr.msk.bf16.vlgmr.msra.gmra.mrb[4].mxu1 %vm250_vm1, %v362_v27 }
 0x235   : > { %876 = vmatpush3.bf16.xpose.msra.mxu1 %v487_v30  ;;  %877 = vmatprep.mubr.msk.bf16.mxu1 %vm943_vm0, %v942_v0 }
 0x236   : > { %887 = vmatprep.subr.bf16.mxu1 %v942_v0 }
 0x23c   : > { %878 = vmatmul.mubr.msk.bf16.vlgmr.msra.gmra.mrb[8].mxu1 %vm250_vm1, %v480_v29 }
 0x23d   : > { %888 = vmatpush3.bf16.xpose.msra.mxu1 %v599_v32  ;;  %889 = vmatprep.mubr.msk.bf16.mxu1 %vm943_vm0, %v942_v0 }
 0x244   : > { %890 = vmatmul.mubr.msk.bf16.vlgmr.msra.gmra.mrb[12].mxu1 %vm250_vm1, %v592_v33 }
 0x2ff   : > { %v1044_v34 = vpop.f32.mrb[0].mxu1 }
 0x300   : > { %v861_v35 = vpop.f32.mrb[1].mxu1 }
 0x301   : > { %v355_v36 = vpop.f32.mrb[2].mxu1 }
 0x302   : > { %v862_v37 = vpop.f32.mrb[3].mxu1 }
 0x307   : > { %v408_v38 = vpop.f32.mrb[4].mxu1 }
 0x308   : > { %v414_v39 = vsel %vm249_vm2, -1e+20, %v408_v38  ;;  %v867_v40 = vpop.f32.mrb[5].mxu1 }
 0x309   : > { %v415_v41 = vmul.f32 0.35355338, %v414_v39  ;;  %v411_v42 = vpop.f32.mrb[6].mxu1 }
 0x30a   : > { %v868_v43 = vpop.f32.mrb[7].mxu1 }
 0x30b   : > { %v416_v44 = vsel %vm250_vm1, %v415_v41, -inf }
 0x30c   : > { %417 = vmax.xlane.f32.xlu1 %v416_v44 }
 0x30f   : > { %v523_v45 = vpop.f32.mrb[8].mxu1 }
 0x310   : > { %v529_v46 = vsel %vm249_vm2, -1e+20, %v523_v45  ;;  %v879_v47 = vpop.f32.mrb[9].mxu1 }
 0x311   : > { %v530_v48 = vmul.f32 0.35355338, %v529_v46  ;;  %v526_v49 = vpop.f32.mrb[10].mxu1 }
 0x312   : > { %v880_v50 = vpop.f32.mrb[11].mxu1 }
 0x313   : > { %v531_v51 = vsel %vm250_vm1, %v530_v48, -inf }
 0x314   : > { %532 = vmax.xlane.f32.xlu0 %v531_v51 }
 0x317   : > { %v635_v52 = vpop.f32.mrb[12].mxu1 }
 0x318   : > { %v641_v53 = vsel %vm249_vm2, -1e+20, %v635_v52  ;;  %v891_v54 = vpop.f32.mrb[13].mxu1 }
 0x319   : > { %v642_v55 = vmul.f32 0.35355338, %v641_v53  ;;  %v638_v56 = vpop.f32.mrb[14].mxu1 }
 0x31a   : > { %v892_v57 = vpop.f32.mrb[15].mxu1 }
 0x31b   : > { %v643_v58 = vsel %vm250_vm1, %v642_v55, -inf }
 0x31c   : > { %644 = vmax.xlane.f32.xlu1 %v643_v58 }
 0x399   : > { %v418_v59 = vpop.xlane.xlu1 %417 }
 0x39a   : > { %v419_v60 = vsub.f32 %v415_v41, %v418_v59 }
 0x39c   : > { %v420_v61 = vmul.f32 1.442695, %v419_v60 }
 0x39e   : > { %922 = vpow2.f32 %v420_v61 }
 0x3a1   : > { %v533_v62 = vpop.xlane.xlu0 %532 }
 0x3a2   : > { %v534_v63 = vsub.f32 %v530_v48, %v533_v62 }
 0x3a4   : > { %v535_v1 = vmul.f32 1.442695, %v534_v63 }
 0x3a6   : > { %924 = vpow2.f32 %v535_v1 }
 0x3a8   : > { %v923_v2 = vpop.eup %922 }
 0x3a9   : > { %v422_v3 = vsel %vm250_vm1, %v923_v2, 0.0  ;;  %v645_v7 = vpop.xlane.xlu1 %644 }
 0x3aa   : > { %423 = vadd.xlane.f32.xlu1 %v422_v3  ;;  %v646_v8 = vsub.f32 %v642_v55, %v645_v7 }
 0x3ac   : > { %v647_v9 = vmul.f32 1.442695, %v646_v8 }
 0x3ae   : > { %926 = vpow2.f32 %v647_v9 }
 0x3b0   : > { %v925_v4 = vpop.eup %924 }
 0x3b1   : > { %v537_v5 = vsel %vm250_vm1, %v925_v4, 0.0 }
 0x3b2   : > { %538 = vadd.xlane.f32.xlu0 %v537_v5 }
 0x3b8   : > { %v927_v10 = vpop.eup %926 }
 0x3b9   : > { %v649_v11 = vsel %vm250_vm1, %v927_v10, 0.0 }
 0x3bb   : > { %543 = vrot.lane.b32.xlu1 %v827_v6, %s945_s29 }
 0x3c8   : > { %431 = vrot.lane.b32.xlu0 %v827_v6, %s944_s28 }
 0x3df   : > { %650 = vadd.xlane.f32.xlu1 %v649_v11 }
 0x3f0   : > { %655 = vrot.lane.b32.xlu1 %v827_v6, %s946_s30 }
 0x437   : > { %v424_v12 = vpop.xlane.xlu1 %423 }
 0x438   : > { %928 = vrcp.f32 %v424_v12 }
 0x43b   : > { %v544_v18 = vpop.permute.xlu1 %543 }
 0x43c   : > { %v549_v20 = vsel %vm314_vm3, %v544_v18, 0 }
 0x43f   : > { %v539_v13 = vpop.xlane.xlu0 %538 }
 0x440   : > { %930 = vrcp.f32 %v539_v13 }
 0x442   : > { %v929_v14 = vpop.eup %928 }
 0x443   : > { %v426_v15 = vmul.f32 %v929_v14, %v923_v2  ;;  %v432_v16 = vpop.permute.xlu0 %431 }
 0x444   : > { %v437_v17 = vsel %vm314_vm3, %v432_v16, 0 }
 0x445   : > { %870 = vmatpush3.bf16.msra.mxu0 %v437_v17  ;;  %v427_v19 = vpack.c.bf16 %v426_v15, %v426_v15 }
 0x446   : > { %881 = vmatprep.subr.bf16.mxu0 %v942_v0 }
 0x448   : > { %872 = vmatmul.mubr.msk.bf16.vlgmr.msra.gmra.mrb[4].mxu0 %vm250_vm1, %v427_v19 }
 0x449   : > { %882 = vmatpush3.bf16.msra.mxu0 %v549_v20  ;;  %883 = vmatprep.mubr.msk.bf16.mxu0 %vm943_vm0, %v942_v0 }
 0x44a   : > { %v931_v21 = vpop.eup %930  ;;  %893 = vmatprep.subr.bf16.mxu0 %v942_v0 }
 0x44b   : > { %v541_v22 = vmul.f32 %v931_v21, %v925_v4 }
 0x44d   : > { %v542_v23 = vpack.c.bf16 %v541_v22, %v541_v22 }
 0x450   : > { %884 = vmatmul.mubr.msk.bf16.vlgmr.msra.gmra.mrb[8].mxu0 %vm250_vm1, %v542_v23 }
 0x451   : > { %895 = vmatprep.mubr.msk.bf16.mxu0 %vm943_vm0, %v942_v0 }
 0x46c   : > { %v651_v24 = vpop.xlane.xlu1 %650 }
 0x46d   : > { %932 = vrcp.f32 %v651_v24 }
 0x470   : > { %v656_v25 = vpop.permute.xlu1 %655 }
 0x471   : > { %v661_v26 = vsel %vm314_vm3, %v656_v25, 0 }
 0x472   : > { %894 = vmatpush3.bf16.msra.mxu0 %v661_v26 }
 0x477   : > { %v933_v27 = vpop.eup %932 }
 0x478   : > { %v653_v28 = vmul.f32 %v933_v27, %v927_v10 }
 0x47a   : > { %v654_v29 = vpack.c.bf16 %v653_v28, %v653_v28 }
 0x47c   : > { %896 = vmatmul.mubr.msk.bf16.vlgmr.msra.gmra.mrb[12].mxu0 %vm250_vm1, %v654_v29 }
 0x51b   : > { %v473_v30 = vpop.f32.mrb[4].mxu0 }
 0x51c   : > { %704 = vrot.lane.b32.xlu0 %v473_v30, %s947_s8  ;;  %v873_v31 = vpop.f32.mrb[5].mxu0 }
 0x51d   : > { %v476_v32 = vpop.f32.mrb[6].mxu0 }
 0x51e   : > { %v874_v33 = vpop.f32.mrb[7].mxu0 }
 0x523   : > { %v585_v35 = vpop.f32.mrb[8].mxu0 }
 0x524   : > { %708 = vrot.lane.b32.xlu1 %v585_v35, %s948_s9  ;;  %v885_v0 = vpop.f32.mrb[9].mxu0 }
 0x525   : > { %v588_v36 = vpop.f32.mrb[10].mxu0 }
 0x526   : > { %v886_v37 = vpop.f32.mrb[11].mxu0 }
 0x54f   : > { %v697_v38 = vpop.f32.mrb[12].mxu0 }
 0x550   : > { %712 = vrot.lane.b32.xlu0 %v697_v38, %s949_s10  ;;  %v897_v39 = vpop.f32.mrb[13].mxu0 }
 0x551   : > { %v700_v40 = vpop.f32.mrb[14].mxu0 }
 0x552   : > { %v898_v41 = vpop.f32.mrb[15].mxu0 }
 0x58e   : > { %v705_v42 = vpop.permute.xlu0 %704 }
 0x58f   : > { %v715_v44 = vsel %vm250_vm1, %v1044_v34, %v705_v42 }
 0x596   : > { %v709_v43 = vpop.permute.xlu1 %708 }
 0x597   : > { %v717_v45 = vsel %vm716_vm4, %v715_v44, %v709_v43 }
 0x5c2   : > { %v713_v46 = vpop.permute.xlu0 %712 }
 0x5c3   : > { %v719_v47 = vsel %vm718_vm5, %v717_v45, %v713_v46 }
 0x5c4   : > { %v720_v48 = vpack.c.bf16 %v719_v47, %v719_v47 }
 0x5c6   : > { %722 = vst.msk [vmem:[%s243_s13] sm:$0xf] %vm721_vm6, %v720_v48 }
 0x5c7 PF: > { %s14_s15 = sadd.s32 1, %s940_s15  }
 0x5c8   : > { %p11_p4 = scmp.ge.s32.totalorder %s14_s15, 4  }
 0x5ca   :  { %13 = sbr.rel (!%p11_p4) target bundleno = 1 (0x1), region = 75 }

// kernel: decoder_forward.28
= control target key start
LH: loop header
LB: loop body
LE: loop exit
PB: predicated region body
PF: predicated region fallthrough
CT: control target
= control target key end

     0   :  { %v155_v0 = vmov 0.0   ;;  %vm156_vm0 = vmmov 0   ;;  %vm46_vm1 = vcmask 261120   ;;  %s192_s1 = inlined_call_operand.vmem [shape: bf16[32,128], index: 1, kind: input, shape index: {}]   ;;  %s193_s0 = inlined_call_operand.vmem [shape: bf16[16,32], index: 0, kind: input, shape index: {}]   ;;  %s194_s2 = inlined_call_operand.vmem [shape: f32[1,128], index: 2, kind: input, shape index: {}]   ;;  %s195_s3 = inlined_call_operand.vmem [shape: bf16[16,128], index: 3, kind: output, shape index: {}]  }
   0x1   :  { %142 = vmatprep.subr.bf16.mxu0 %v155_v0  ;;  %v152_v1 = vld [vmem:[%s192_s1] sm:$0xff]   ;;  %146 = vmatprep.mubr.msk.bf16.mxu0 %vm156_vm0, %v155_v0  ;;  %v153_v2 = vld [vmem:[%s192_s1 + $0x8] sm:$0xff]  }
   0x2   :  { %143 = vmatpush3.bf16.msra.mxu0 %v152_v1  ;;  %v154_v3 = vld [vmem:[%s193_s0] sm:$0xff]  }
   0x3   :  { %144 = vmatprep.subr.bf16.mxu0 %v155_v0  ;;  %v129_v4 = vld [vmem:[%s194_s2] ss:$0 sm:$0xff] }
   0x6   :  { %145 = vmatpush3.bf16.msra.mxu0 %v153_v2 }
   0x9   :  { %147 = vmatmul.mubr.msk.bf16.vlgmr.msra.gmra.mrb[0].mxu0 %vm46_vm1, %v154_v3 }
  0xdc   :  { %v84_v5 = vpop.f32.mrb[0].mxu0 }
  0xdd   :  { %v107_v6 = vadd.f32 %v129_v4, %v84_v5  ;;  %v148_v7 = vpop.f32.mrb[1].mxu0 }
  0xde   :  { %v87_v8 = vpop.f32.mrb[2].mxu0 }
  0xdf   :  { %v108_v9 = vadd.f32 %v129_v4, %v87_v8  ;;  %v149_v10 = vpop.f32.mrb[3].mxu0  ;;  %v109_v11 = vmax.f32 %v107_v6, 0.0 }
  0xe1   :  { %v110_v12 = vmax.f32 %v108_v9, 0.0 }
  0xe3   :  { %v137_v13 = vpack.c.bf16 %v110_v12, %v109_v11 }
  0xe5   :  { %138 = vst [vmem:[%s195_s3] sm:$0xff] %v137_v13  }

// kernel: decoder_forward.26
= control target key start
LH: loop header
LB: loop body
LE: loop exit
PB: predicated region body
PF: predicated region fallthrough
CT: control target
= control target key end

     0   :  { %s907_s12 = smov 0   ;;  %s1002_s0 = inlined_call_operand.vmem [shape: bf16[2,8,32], index: 0, kind: input, shape index: {}]   ;;  %s1003_s1 = inlined_call_operand.vmem [shape: bf16[2,8,32], index: 1, kind: input, shape index: {}]   ;;  %s1004_s2 = inlined_call_operand.vmem [shape: bf16[2,8,32], index: 2, kind: input, shape index: {}]   ;;  %s1005_s3 = inlined_call_operand.vmem [shape: bf16[2,8,32], index: 3, kind: output, shape index: {}]  }
   0x1 LB: > { %s750_s13 = sadd.s32 4294967295, %s877_s12   ;;  %p754_p0 = scmp.ge.s32.totalorder %s877_s12, 1  ;;  %s877_s12 = sphi %s907_s12, %s13_s12  }
   0x2   : > { %p154_p1 = scmp.lt.s32.totalorder %s877_s12, 3 }
   0x4   : > { %p155_p2 = pnand %p754_p0, %p154_p1 }
   0x5   : > { %p184_p3 = scmp.lt.s32.totalorder (!%p155_p2), %s750_s13, 1  ;;  %v879_v0 = vmov (!%p155_p2), 0.0   ;;  %vm880_vm0 = vmmov (!%p155_p2), 0   ;;  %vm204_vm1 = vcmask (!%p155_p2), 64512   ;;  %s881_s21 = smov (!%p155_p2), 120   ;;  %vm267_vm2 = vcmask (!%p155_p2), 1043456  }
   0x6   : > { %158 = sbr.rel (%p155_p2) target bundleno = 1477 (0x5c5), region = 32  ;;  %788 = vmatprep.subr.bf16.mxu0 (!%p155_p2), %v879_v0  ;;  %790 = vmatprep.mubr.msk.bf16.mxu0 (!%p155_p2), %vm880_vm0, %v879_v0  ;;  %s882_s22 = smov (!%p155_p2), 112   ;;  %vm666_vm3 = vcmask (!%p155_p2), 130048   ;;  %vm668_vm4 = vcmask (!%p155_p2), 195584   ;;  %vm671_vm5 = vcmask (!%p155_p2), 257024  }
   0x7   : > { %794 = vmatprep.subr.bf16.mxu1 (!%p155_p2), %v879_v0  ;;  %796 = vmatprep.mubr.msk.bf16.mxu1 (!%p155_p2), %vm880_vm0, %v879_v0  ;;  %s883_s23 = smov (!%p155_p2), 104   ;;  %s884_s27 = smov (!%p155_p2), 8  }
   0x8   : > { %s885_s28 = smov (!%p155_p2), 16   ;;  %s886_s29 = smov (!%p155_p2), 24  }
   0xd   : > { %s1007_s13 = smov (!%p184_p3, %s750_s13), 1 }
   0xe   : > { %s921_s14 = sshll.u32 %s1007_s13, 2 }
   0xf   : > { %s191_s17 = scalar_lea.vmem %s1003_s1, %s921_s14  ;;  %s187_s20 = scalar_lea.vmem %s1002_s0, %s921_s14 }
  0x10   : > { %v202_v1 = vld [vmem:[%s191_s17] sm:$0xf]  ;;  %s195_s26 = scalar_lea.vmem %s1004_s2, %s921_s14  ;;  %s199_s5 = scalar_lea.vmem %s1005_s3, %s921_s14 }
  0x11   : > { %v209_v2 = vsel %vm204_vm1, %v202_v1, 0  ;;  %v201_v3 = vld [vmem:[%s187_s20] sm:$0xf]  ;;  %v762_v10 = vcombine.low %v202_v1, %v202_v1 }
  0x12   : > { %789 = vmatpush3.bf16.xpose.msra.mxu0 %v209_v2  ;;  %v761_v11 = vcombine.low %v201_v3, %v201_v3  ;;  %v947_v17 = vld [vmem:[%s195_s26] sm:$0xf] }
  0x13   : > { %806 = vmatprep.subr.bf16.mxu0 %v879_v0  ;;  %319 = vrot.lane.b32.xlu1 %v762_v10, %s881_s21  ;;  %v269_v18 = vsel %vm267_vm2, %v947_v17, 0  ;;  %v764_v1 = vcombine.low %v947_v17, %v947_v17 }
  0x14   : > { %795 = vmatpush3.bf16.msra.mxu1 %v269_v18 }
  0x15   : > { %800 = vmatprep.subr.bf16.mxu1 %v879_v0 }
  0x17   : > { %314 = vrot.lane.b32.xlu1 %v761_v11, %s881_s21 }
  0x19   : > { %791 = vmatmul.mubr.msk.bf16.vlgmr.msra.gmra.mrb[0].mxu0 %vm204_vm1, %v201_v3 }
  0x1a   : > { %808 = vmatprep.mubr.msk.bf16.mxu0 %vm880_vm0, %v879_v0 }
  0x1b   : > { %431 = vrot.lane.b32.xlu1 %v761_v11, %s882_s22 }
  0x1f   : > { %544 = vrot.lane.b32.xlu1 %v762_v10, %s883_s23 }
  0x23   : > { %542 = vrot.lane.b32.xlu1 %v761_v11, %s883_s23 }
  0x85   : > { %v320_v21 = vpop.permute.xlu1 %319 }
  0x86   : > { %v325_v23 = vsel %vm204_vm1, %v320_v21, 0 }
  0x89   : > { %v315_v25 = vpop.permute.xlu1 %314 }
  0x8d   : > { %v432_v27 = vpop.permute.xlu1 %431 }
  0x91   : > { %v545_v29 = vpop.permute.xlu1 %544 }
  0x92   : > { %v550_v30 = vsel %vm204_vm1, %v545_v29, 0 }
  0x95   : > { %v543_v31 = vpop.permute.xlu1 %542 }
  0xec   : > { %v245_v4 = vpop.f32.mrb[0].mxu0 }
  0xed   : > { %v251_v5 = vmul.f32 0.35355338, %v245_v4  ;;  %v792_v6 = vpop.f32.mrb[1].mxu0 }
  0xee   : > { %v248_v7 = vpop.f32.mrb[2].mxu0 }
  0xef   : > { %v793_v8 = vpop.f32.mrb[3].mxu0  ;;  %v252_v9 = vsel %vm204_vm1, %v251_v5, -inf }
  0xf0   : > { %253 = vmax.xlane.f32.xlu0 %v252_v9 }
 0x17d   : > { %v254_v12 = vpop.xlane.xlu0 %253 }
 0x17e   : > { %v255_v13 = vsub.f32 %v251_v5, %v254_v12 }
 0x180   : > { %v256_v14 = vmul.f32 1.442695, %v255_v13 }
 0x182   : > { %855 = vpow2.f32 %v256_v14 }
 0x18c   : > { %v856_v15 = vpop.eup %855 }
 0x18d   : > { %v258_v16 = vsel %vm204_vm1, %v856_v15, 0.0 }
 0x18e   : > { %259 = vadd.xlane.f32.xlu0 %v258_v16 }
 0x1a4   : > { %433 = vrot.lane.b32.xlu0 %v762_v10, %s882_s22 }
 0x21b   : > { %v260_v19 = vpop.xlane.xlu0 %259 }
 0x21c   : > { %857 = vrcp.f32 %v260_v19 }
 0x21f   : > { %v434_v26 = vpop.permute.xlu0 %433 }
 0x220   : > { %v439_v28 = vsel %vm204_vm1, %v434_v26, 0 }
 0x226   : > { %v858_v20 = vpop.eup %857 }
 0x227   : > { %v262_v22 = vmul.f32 %v858_v20, %v856_v15 }
 0x229   : > { %v263_v24 = vpack.c.bf16 %v262_v22, %v262_v22 }
 0x22b   : > { %797 = vmatmul.mubr.msk.bf16.vlgmr.msra.gmra.mrb[0].mxu1 %vm204_vm1, %v263_v24 }
 0x22c   : > { %801 = vmatpush3.bf16.xpose.msra.mxu1 %v325_v23  ;;  %802 = vmatprep.mubr.msk.bf16.mxu1 %vm880_vm0, %v879_v0 }
 0x22d   : > { %812 = vmatprep.subr.bf16.mxu1 %v879_v0 }
 0x233   : > { %803 = vmatmul.mubr.msk.bf16.vlgmr.msra.gmra.mrb[4].mxu1 %vm204_vm1, %v315_v25 }
 0x234   : > { %813 = vmatpush3.bf16.xpose.msra.mxu1 %v439_v28  ;;  %814 = vmatprep.mubr.msk.bf16.mxu1 %vm880_vm0, %v879_v0 }
 0x235   : > { %824 = vmatprep.subr.bf16.mxu1 %v879_v0 }
 0x23b   : > { %815 = vmatmul.mubr.msk.bf16.vlgmr.msra.gmra.mrb[8].mxu1 %vm204_vm1, %v432_v27 }
 0x23c   : > { %825 = vmatpush3.bf16.xpose.msra.mxu1 %v550_v30  ;;  %826 = vmatprep.mubr.msk.bf16.mxu1 %vm880_vm0, %v879_v0 }
 0x243   : > { %827 = vmatmul.mubr.msk.bf16.vlgmr.msra.gmra.mrb[12].mxu1 %vm204_vm1, %v543_v31 }
 0x2fe   : > { %v968_v32 = vpop.f32.mrb[0].mxu1 }
 0x2ff   : > { %v798_v33 = vpop.f32.mrb[1].mxu1 }
 0x300   : > { %v308_v34 = vpop.f32.mrb[2].mxu1 }
 0x301   : > { %v799_v35 = vpop.f32.mrb[3].mxu1 }
 0x306   : > { %v361_v36 = vpop.f32.mrb[4].mxu1 }
 0x307   : > { %v367_v37 = vmul.f32 0.35355338, %v361_v36  ;;  %v804_v38 = vpop.f32.mrb[5].mxu1 }
 0x308   : > { %v364_v39 = vpop.f32.mrb[6].mxu1 }
 0x309   : > { %v805_v40 = vpop.f32.mrb[7].mxu1  ;;  %v368_v41 = vsel %vm204_vm1, %v367_v37, -inf }
 0x30a   : > { %369 = vmax.xlane.f32.xlu1 %v368_v41 }
 0x30e   : > { %v475_v42 = vpop.f32.mrb[8].mxu1 }
 0x30f   : > { %v481_v43 = vmul.f32 0.35355338, %v475_v42  ;;  %v816_v44 = vpop.f32.mrb[9].mxu1 }
 0x310   : > { %v478_v45 = vpop.f32.mrb[10].mxu1 }
 0x311   : > { %v482_v46 = vsel %vm204_vm1, %v481_v43, -inf  ;;  %v817_v47 = vpop.f32.mrb[11].mxu1 }
 0x312   : > { %483 = vmax.xlane.f32.xlu0 %v482_v46 }
 0x316   : > { %v586_v48 = vpop.f32.mrb[12].mxu1 }
 0x317   : > { %v592_v49 = vmul.f32 0.35355338, %v586_v48  ;;  %v828_v50 = vpop.f32.mrb[13].mxu1 }
 0x318   : > { %v589_v51 = vpop.f32.mrb[14].mxu1 }
 0x319   : > { %v593_v52 = vsel %vm204_vm1, %v592_v49, -inf  ;;  %v829_v53 = vpop.f32.mrb[15].mxu1 }
 0x31a   : > { %594 = vmax.xlane.f32.xlu1 %v593_v52 }
 0x397   : > { %v370_v54 = vpop.xlane.xlu1 %369 }
 0x398   : > { %v371_v55 = vsub.f32 %v367_v37, %v370_v54 }
 0x39a   : > { %v372_v56 = vmul.f32 1.442695, %v371_v55 }
 0x39c   : > { %859 = vpow2.f32 %v372_v56 }
 0x39f   : > { %v484_v57 = vpop.xlane.xlu0 %483 }
 0x3a0   : > { %v485_v58 = vsub.f32 %v481_v43, %v484_v57 }
 0x3a2   : > { %v486_v59 = vmul.f32 1.442695, %v485_v58 }
 0x3a4   : > { %861 = vpow2.f32 %v486_v59 }
 0x3a6   : > { %v860_v60 = vpop.eup %859 }
 0x3a7   : > { %v374_v61 = vsel %vm204_vm1, %v860_v60, 0.0  ;;  %v595_v2 = vpop.xlane.xlu1 %594 }
 0x3a8   : > { %375 = vadd.xlane.f32.xlu1 %v374_v61  ;;  %v596_v3 = vsub.f32 %v592_v49, %v595_v2 }
 0x3aa   : > { %v597_v4 = vmul.f32 1.442695, %v596_v3 }
 0x3ac   : > { %863 = vpow2.f32 %v597_v4 }
 0x3ae   : > { %v862_v62 = vpop.eup %861 }
 0x3af   : > { %v488_v63 = vsel %vm204_vm1, %v862_v62, 0.0 }
 0x3b0   : > { %489 = vadd.xlane.f32.xlu0 %v488_v63 }
 0x3b6   : > { %v864_v5 = vpop.eup %863 }
 0x3b7   : > { %v599_v6 = vsel %vm204_vm1, %v864_v5, 0.0 }
 0x3b9   : > { %494 = vrot.lane.b32.xlu1 %v764_v1, %s882_s22 }
 0x3c6   : > { %383 = vrot.lane.b32.xlu0 %v764_v1, %s881_s21 }
 0x3dd   : > { %600 = vadd.xlane.f32.xlu1 %v599_v6 }
 0x3ee   : > { %605 = vrot.lane.b32.xlu1 %v764_v1, %s883_s23 }
 0x435   : > { %v376_v7 = vpop.xlane.xlu1 %375 }
 0x436   : > { %865 = vrcp.f32 %v376_v7 }
 0x439   : > { %v495_v13 = vpop.permute.xlu1 %494 }
 0x43a   : > { %v500_v15 = vsel %vm267_vm2, %v495_v13, 0 }
 0x43d   : > { %v490_v8 = vpop.xlane.xlu0 %489 }
 0x43e   : > { %867 = vrcp.f32 %v490_v8 }
 0x440   : > { %v866_v9 = vpop.eup %865 }
 0x441   : > { %v378_v10 = vmul.f32 %v866_v9, %v860_v60  ;;  %v384_v11 = vpop.permute.xlu0 %383 }
 0x442   : > { %v389_v12 = vsel %vm267_vm2, %v384_v11, 0 }
 0x443   : > { %807 = vmatpush3.bf16.msra.mxu0 %v389_v12  ;;  %v379_v14 = vpack.c.bf16 %v378_v10, %v378_v10 }
 0x444   : > { %818 = vmatprep.subr.bf16.mxu0 %v879_v0 }
 0x446   : > { %809 = vmatmul.mubr.msk.bf16.vlgmr.msra.gmra.mrb[4].mxu0 %vm204_vm1, %v379_v14 }
 0x447   : > { %819 = vmatpush3.bf16.msra.mxu0 %v500_v15  ;;  %820 = vmatprep.mubr.msk.bf16.mxu0 %vm880_vm0, %v879_v0 }
 0x448   : > { %v868_v16 = vpop.eup %867  ;;  %830 = vmatprep.subr.bf16.mxu0 %v879_v0 }
 0x449   : > { %v492_v17 = vmul.f32 %v868_v16, %v862_v62 }
 0x44b   : > { %v493_v18 = vpack.c.bf16 %v492_v17, %v492_v17 }
 0x44e   : > { %821 = vmatmul.mubr.msk.bf16.vlgmr.msra.gmra.mrb[8].mxu0 %vm204_vm1, %v493_v18 }
 0x44f   : > { %832 = vmatprep.mubr.msk.bf16.mxu0 %vm880_vm0, %v879_v0 }
 0x46a   : > { %v601_v19 = vpop.xlane.xlu1 %600 }
 0x46b   : > { %869 = vrcp.f32 %v601_v19 }
 0x46e   : > { %v606_v20 = vpop.permute.xlu1 %605 }
 0x46f   : > { %v611_v21 = vsel %vm267_vm2, %v606_v20, 0 }
 0x470   : > { %831 = vmatpush3.bf16.msra.mxu0 %v611_v21 }
 0x475   : > { %v870_v22 = vpop.eup %869 }
 0x476   : > { %v603_v23 = vmul.f32 %v870_v22, %v864_v5 }
 0x478   : > { %v604_v24 = vpack.c.bf16 %v603_v23, %v603_v23 }
 0x47a   : > { %833 = vmatmul.mubr.msk.bf16.vlgmr.msra.gmra.mrb[12].mxu0 %vm204_vm1, %v604_v24 }
 0x519   : > { %v425_v25 = vpop.f32.mrb[4].mxu0 }
 0x51a   : > { %654 = vrot.lane.b32.xlu0 %v425_v25, %s884_s27  ;;  %v810_v26 = vpop.f32.mrb[5].mxu0 }
 0x51b   : > { %v428_v27 = vpop.f32.mrb[6].mxu0 }
 0x51c   : > { %v811_v28 = vpop.f32.mrb[7].mxu0 }
 0x521   : > { %v536_v29 = vpop.f32.mrb[8].mxu0 }
 0x522   : > { %658 = vrot.lane.b32.xlu1 %v536_v29, %s885_s28  ;;  %v822_v0 = vpop.f32.mrb[9].mxu0 }
 0x523   : > { %v539_v30 = vpop.f32.mrb[10].mxu0 }
 0x524   : > { %v823_v31 = vpop.f32.mrb[11].mxu0 }
 0x54d   : > { %v647_v33 = vpop.f32.mrb[12].mxu0 }
 0x54e   : > { %662 = vrot.lane.b32.xlu0 %v647_v33, %s886_s29  ;;  %v834_v34 = vpop.f32.mrb[13].mxu0 }
 0x54f   : > { %v650_v35 = vpop.f32.mrb[14].mxu0 }
 0x550   : > { %v835_v36 = vpop.f32.mrb[15].mxu0 }
 0x58c   : > { %v655_v37 = vpop.permute.xlu0 %654 }
 0x58d   : > { %v665_v39 = vsel %vm204_vm1, %v968_v32, %v655_v37 }
 0x594   : > { %v659_v38 = vpop.permute.xlu1 %658 }
 0x595   : > { %v667_v40 = vsel %vm666_vm3, %v665_v39, %v659_v38 }
 0x5c0   : > { %v663_v41 = vpop.permute.xlu0 %662 }
 0x5c1   : > { %v669_v42 = vsel %vm668_vm4, %v667_v40, %v663_v41 }
 0x5c2   : > { %v670_v43 = vpack.c.bf16 %v669_v42, %v669_v42 }
 0x5c4   : > { %672 = vst.msk [vmem:[%s199_s5] sm:$0xf] %vm671_vm5, %v670_v43 }
 0x5c5 PF: > { %s13_s12 = sadd.s32 1, %s877_s12  }
 0x5c6   : > { %p10_p4 = scmp.ge.s32.totalorder %s13_s12, 4  }
 0x5c8   :  { %12 = sbr.rel (!%p10_p4) target bundleno = 1 (0x1), region = 68 }

// kernel: decoder_forward.29
= control target key start
LH: loop header
LB: loop body
LE: loop exit
PB: predicated region body
PF: predicated region fallthrough
CT: control target
= control target key end

     0   :  { %vm28_vm0 = vcmask 261120   ;;  %v295_v0 = vmov 0.0   ;;  %vm296_vm1 = vmmov 0   ;;  %vm224_vm2 = vcmask 257024   ;;  %s385_s1 = inlined_call_operand.vmem [shape: bf16[128,32], index: 1, kind: input, shape index: {}]   ;;  %s386_s0 = inlined_call_operand.vmem [shape: bf16[16,128], index: 0, kind: input, shape index: {}]   ;;  %s387_s3 = inlined_call_operand.vmem [shape: bf16[16,32], index: 3, kind: input, shape index: {}]   ;;  %s388_s2 = inlined_call_operand.vmem [shape: f32[1,32], index: 2, kind: input, shape index: {}]   ;;  %s389_s4 = inlined_call_operand.vmem [shape: f32[1,32], index: 4, kind: input, shape index: {}]   ;;  %s390_s5 = inlined_call_operand.vmem [shape: f32[1,32], index: 5, kind: input, shape index: {}]   ;;  %s391_s6 = inlined_call_operand.vmem [shape: bf16[16,32], index: 6, kind: output, shape index: {}]  }
   0x1   :  { %260 = vmatprep.subr.bf16.mxu0 %v295_v0  ;;  %v282_v1 = vld [vmem:[%s385_s1] sm:$0xff]   ;;  %276 = vmatprep.mubr.msk.bf16.mxu0 %vm296_vm1, %v295_v0  ;;  %29 = vst.msk [vmem:[#allocation2] sm:$0xff] %vm28_vm0, %v295_v0  ;;  %30 = vst.msk [vmem:[#allocation2 + $0x8] sm:$0xff] %vm28_vm0, %v295_v0  ;;  %v283_v2 = vld [vmem:[%s385_s1 + $0x8] sm:$0xff]  }
   0x2   :  { %261 = vmatpush3.bf16.msra.mxu0 %v282_v1  ;;  %v284_v3 = vld [vmem:[%s385_s1 + $0x10] sm:$0xff]   ;;  %v285_v4 = vld [vmem:[%s385_s1 + $0x18] sm:$0xff]   ;;  %v286_v5 = vld [vmem:[%s385_s1 + $0x20] sm:$0xff]  }
   0x3   :  { %262 = vmatprep.subr.bf16.mxu0 %v295_v0  ;;  %v287_v6 = vld [vmem:[%s385_s1 + $0x28] sm:$0xff]   ;;  %v288_v7 = vld [vmem:[%s385_s1 + $0x30] sm:$0xff]   ;;  %v289_v8 = vld [vmem:[%s385_s1 + $0x38] sm:$0xff]  }
   0x4   :  { %v290_v9 = vld [vmem:[%s386_s0] sm:$0xff]  }
   0x5   :  { %v248_v18 = vld [vmem:[%s387_s3] sm:$0xff]  }
   0x6   :  { %263 = vmatpush3.bf16.msra.mxu0 %v283_v2  ;;  %v240_v19 = vld [vmem:[%s388_s2] ss:$0 sm:$0xff]  ;;  %v249_v20 = vunpack.c.l.bf16 %v248_v18  ;;  %v250_v23 = vunpack.c.h.bf16 %v248_v18 }
   0x7   :  { %264 = vmatprep.subr.bf16.mxu0 %v295_v0  ;;  %v241_v47 = vld [vmem:[%s389_s4] ss:$0 sm:$0xff] }
   0x8   :  { %v31_v10 = vld [vmem:[#allocation2] sm:$0xff]  ;;  %v32_v12 = vld [vmem:[#allocation2 + $0x8] sm:$0xff] }
   0x9   :  { %v242_v49 = vld [vmem:[%s390_s5] ss:$0 sm:$0xff] }
   0xa   :  { %265 = vmatpush3.bf16.msra.mxu0 %v284_v3 }
   0xb   :  { %266 = vmatprep.subr.bf16.mxu0 %v295_v0 }
   0xe   :  { %267 = vmatpush3.bf16.msra.mxu0 %v285_v4 }
   0xf   :  { %268 = vmatprep.subr.bf16.mxu0 %v295_v0 }
  0x12   :  { %269 = vmatpush3.bf16.msra.mxu0 %v286_v5 }
  0x13   :  { %270 = vmatprep.subr.bf16.mxu0 %v295_v0 }
  0x16   :  { %271 = vmatpush3.bf16.msra.mxu0 %v287_v6 }
  0x17   :  { %272 = vmatprep.subr.bf16.mxu0 %v295_v0 }
  0x1a   :  { %273 = vmatpush3.bf16.msra.mxu0 %v288_v7 }
  0x1b   :  { %274 = vmatprep.subr.bf16.mxu0 %v295_v0 }
  0x1e   :  { %275 = vmatpush3.bf16.msra.mxu0 %v289_v8 }
  0x21   :  { %277 = vmatmul.mubr.bf16.vlgmr.msra.gmra.mrb[0].mxu0 %v290_v9 }
  0xf4   :  { %v139_v11 = vpop.f32.mrb[0].mxu0 }
  0xf5   :  { %v146_v13 = vadd.f32 %v139_v11, %v31_v10  ;;  %v278_v14 = vpop.f32.mrb[1].mxu0 }
  0xf6   :  { %v142_v15 = vpop.f32.mrb[2].mxu0 }
  0xf7   :  { %149 = vst.msk [vmem:[#allocation2] sm:$0xff] %vm28_vm0, %v146_v13  ;;  %v147_v16 = vadd.f32 %v142_v15, %v32_v12  ;;  %v279_v17 = vpop.f32.mrb[3].mxu0 }
  0xf9   :  { %150 = vst.msk [vmem:[#allocation2 + $0x8] sm:$0xff] %vm28_vm0, %v147_v16 }
  0xfe   :  { %v154_v21 = vld [vmem:[#allocation2] sm:$0xff] }
  0xff   :  { %v163_v22 = vadd.f32 %v240_v19, %v154_v21 }
 0x100   :  { %v155_v24 = vld [vmem:[#allocation2 + $0x8] sm:$0xff] }
 0x101   :  { %v169_v25 = vadd.f32 %v249_v20, %v163_v22  ;;  %v164_v26 = vadd.f32 %v240_v19, %v155_v24 }
 0x103   :  { %v171_v27 = vsel %vm28_vm0, %v169_v25, 0.0  ;;  %v170_v28 = vadd.f32 %v250_v23, %v164_v26 }
 0x104   :  { %172 = vadd.xlane.f32.xlu0 %v171_v27 }
 0x105   :  { %v174_v29 = vsel %vm28_vm0, %v170_v28, 0.0 }
 0x108   :  { %175 = vadd.xlane.f32.xlu0 %v174_v29 }
 0x191   :  { %v173_v30 = vpop.xlane.xlu0 %172 }
 0x192   :  { %v178_v31 = vmul.f32 0.03125, %v173_v30 }
 0x194   :  { %v180_v32 = vsub.f32 %v169_v25, %v178_v31 }
 0x195   :  { %v176_v33 = vpop.xlane.xlu0 %175 }
 0x196   :  { %v179_v34 = vmul.f32 0.03125, %v176_v33  ;;  %v182_v35 = vmul.f32 %v180_v32, %v180_v32 }
 0x198   :  { %v181_v36 = vsub.f32 %v170_v28, %v179_v34  ;;  %v184_v37 = vsel %vm28_vm0, %v182_v35, 0.0 }
 0x199   :  { %185 = vadd.xlane.f32.xlu1 %v184_v37 }
 0x19a   :  { %v183_v38 = vmul.f32 %v181_v36, %v181_v36 }
 0x19c   :  { %v187_v39 = vsel %vm28_vm0, %v183_v38, 0.0 }
 0x19d   :  { %188 = vadd.xlane.f32.xlu1 %v187_v39 }
 0x226   :  { %v186_v40 = vpop.xlane.xlu1 %185 }
 0x227   :  { %v190_v41 = vmul.f32 0.03125, %v186_v40 }
 0x229   :  { %v192_v42 = vadd.f32 1e-05, %v190_v41 }
 0x22a   :  { %v189_v43 = vpop.xlane.xlu1 %188 }
 0x22b   :  { %291 = vrsqrt.f32 %v192_v42  ;;  %v191_v44 = vmul.f32 0.03125, %v189_v43 }
 0x22d   :  { %v193_v45 = vadd.f32 1e-05, %v191_v44 }
 0x22f   :  { %293 = vrsqrt.f32 %v193_v45 }
 0x235   :  { %v292_v46 = vpop.eup %291 }
 0x236   :  { %v196_v48 = vmul.f32 %v292_v46, %v180_v32 }
 0x238   :  { %v205_v50 = vmul.f32 %v241_v47, %v196_v48 }
 0x239   :  { %v294_v51 = vpop.eup %293 }
 0x23a   :  { %v214_v52 = vadd.f32 %v242_v49, %v205_v50  ;;  %v197_v53 = vmul.f32 %v294_v51, %v181_v36 }
 0x23c   :  { %v245_v54 = vpack.c.bf16 %v214_v52, %v214_v52  ;;  %v206_v55 = vmul.f32 %v241_v47, %v197_v53 }
 0x23e   :  { %225 = vst.msk [vmem:[%s391_s6] sm:$0xf] %vm224_vm2, %v245_v54  ;;  %v215_v56 = vadd.f32 %v242_v49, %v206_v55 }
 0x240   :  { %v246_v57 = vpack.c.bf16 %v215_v56, %v215_v56 }
 0x242   :  { %226 = vst.msk [vmem:[%s391_s6 + $0x4] sm:$0xf] %vm224_vm2, %v246_v57 }

</bundles_post_ra>
